<compile_context>
chip_gen: v6e
topology: v6e:2x2x1
jax: 0.10.0
libtpu: 0.0.40
codegen_flags: <defaults>
</compile_context>

<pallas_src>
import functools

import jax
import jax.numpy as jnp
from jax.experimental import pallas as pl
from jax.experimental.pallas import tpu as pltpu

_F32 = jnp.float32
_HIGHEST = jax.lax.Precision.HIGHEST


# --------------------------------------------------------------------------
# VMEM-capacity-aware tile selection.
# --------------------------------------------------------------------------
def _vmem_capacity_bytes():
    try:
        return int(pltpu.get_tpu_info().vmem_capacity_bytes)
    except Exception:
        return 64 * 1024 * 1024            # conservative (v7x per-TC VMEM)


def _choose_tiles(b, c, t, hw, *, dtype_bytes=4, vmem_capacity=None, max_tc=32):
    """Pick (channel tile, hw tile) so a streamed block is a few MiB."""
    if vmem_capacity is None:
        vmem_capacity = _vmem_capacity_bytes()
    # Big enough to amortize ~0.35us/step overhead, small enough that pass 2's
    # double buffers (~4x tile) fit comfortably in VMEM on every generation.
    target_bytes = int(min(8 << 20, max(2 << 20, vmem_capacity // 12)))

    row_bytes = b * t * dtype_bytes        # bytes per hw lane per channel
    t_hw = hw                              # full extent is always a legal block
    if hw % 128 == 0 and row_bytes * hw > target_bytes:
        # hw is large: tile it, but never below 1024 lanes (tiny hw tiles turn
        # each DMA into short strided runs and many grid steps).
        cand = min(hw, (target_bytes // row_bytes) // 128 * 128)
        while cand >= 1024:
            if hw % cand == 0:
                t_hw = cand
                break
            cand -= 128

    per_c = b * t * t_hw * dtype_bytes
    tc = max(1, min(max_tc, c, target_bytes // max(per_c, 1)))
    while c % tc != 0:
        tc -= 1
    return int(tc), int(t_hw)


# --------------------------------------------------------------------------
# Pass 1: partial scores  part[b, i, j] = sum_{k in tile, n in tile}
#                                        q[b, k, i, n] * q[b, k, j, n]
# Accumulated directly into the resident output block across the channel
# (reduction) grid axis; one slab per hw tile (parallel axis).
# --------------------------------------------------------------------------
def _scores_kernel(q_ref, m_ref, *, tc):
    ci = pl.program_id(1)                  # channel-tile reduction axis (last)

    @pl.when(ci == 0)
    def _():
        m_ref[...] = jnp.zeros_like(m_ref)

    part = jnp.zeros(m_ref.shape, _F32)
    for k in range(tc):                    # small static unroll (tc <= 32)
        qc = q_ref[:, k]                   # (b, t, t_hw) ref slice: free view
        part = part + jnp.einsum(
            'bin,bjn->bij', qc, qc,
            preferred_element_type=_F32, precision=_HIGHEST)
    m_ref[...] += part


# --------------------------------------------------------------------------
# Pass 2: out[b, c, i, hw] = sum_j m[b, i, j] * v[b, c, j, hw]
# Tiny prob matrix resident; v/out streamed; lane-dense stores on hw.
# --------------------------------------------------------------------------
def _apply_kernel(m_ref, v_ref, o_ref, *, tc):
    m = m_ref[...]                         # (b, t, t) tiny, stays in vregs
    for k in range(tc):
        vk = v_ref[:, k]                   # (b, t, t_hw) ref slice: free view
        o_ref[:, k] = jnp.einsum(
            'bij,bjn->bin', m, vk,
            preferred_element_type=_F32, precision=_HIGHEST
        ).astype(o_ref.dtype)


# --------------------------------------------------------------------------
# Wrapper
# --------------------------------------------------------------------------
@jax.jit
def temporal_attention(x, x_v):
    """Pallas implementation of TemporalAttention.forward.

    x, x_v: (b, c, t, h, w) float32 arrays.  Returns (b, c, t, h, w) float32.
    """
    b, c, t, h, w = x.shape
    hw = h * w
    xq = x.reshape(b, c, t, hw)            # contiguous reshape: no data movement
    xv = x_v.reshape(b, c, t, hw)

    vmem_capacity = _vmem_capacity_bytes()
    tc, t_hw = _choose_tiles(b, c, t, hw, vmem_capacity=vmem_capacity)
    n_c, n_hw = c // tc, hw // t_hw

    tile_bytes = b * tc * t * t_hw * 4
    # Pass 2 double-buffers both the v tile and the out tile (~4x tile bytes);
    # keep headroom for compiler scratch (v7x only has 64 MiB/TC).
    vmem_limit = int(max(32 << 20,
                         min(4 * tile_bytes + (16 << 20),
                             vmem_capacity * 3 // 4)))

    # ---- pass 1: per-hw-tile partial score slabs -------------------------
    partials = pl.pallas_call(
        functools.partial(_scores_kernel, tc=tc),
        out_shape=jax.ShapeDtypeStruct((n_hw, b, t, t), jnp.float32),
        grid=(n_hw, n_c),
        in_specs=[pl.BlockSpec((b, tc, t, t_hw), lambda ni, ci: (0, ci, 0, ni))],
        out_specs=pl.BlockSpec((None, b, t, t), lambda ni, ci: (ni, 0, 0, 0)),
        compiler_params=pltpu.CompilerParams(
            dimension_semantics=("parallel", "arbitrary"),
            vmem_limit_bytes=vmem_limit),
    )(xq)

    # tiny (n_hw, b, t, t) slab: finish the reduction + BATCH-axis softmax.
    scores = jnp.sum(partials, axis=0)                        # (b, t, t)
    scores = scores - jnp.max(scores, axis=0, keepdims=True)  # softmax over b
    e = jnp.exp(scores)
    m_t = e / jnp.sum(e, axis=0, keepdims=True)

    # ---- pass 2: apply probs to x_v, output already in (b, c, t, hw) -----
    tile_spec = pl.BlockSpec((b, tc, t, t_hw), lambda ci, ni: (0, ci, 0, ni))
    probs_spec = pl.BlockSpec((b, t, t), lambda ci, ni: (0, 0, 0))

    out = pl.pallas_call(
        functools.partial(_apply_kernel, tc=tc),
        out_shape=jax.ShapeDtypeStruct((b, c, t, hw), jnp.float32),
        grid=(n_c, n_hw),
        in_specs=[probs_spec, tile_spec],
        out_specs=tile_spec,
        compiler_params=pltpu.CompilerParams(
            dimension_semantics=("parallel", "parallel"),
            vmem_limit_bytes=vmem_limit),
    )(m_t, xv)

    return out.reshape(b, c, t, h, w)


# --------------------------------------------------------------------------
# Pure-JAX reference mirroring the PyTorch module exactly.
# --------------------------------------------------------------------------
def temporal_attention_ref(x, x_v):
    b, c, t, h, w = x.shape
    r_q = x.transpose(0, 2, 1, 3, 4).reshape(b, t, c * h * w)
    r_k = jnp.swapaxes(r_q, 1, 2)
    r_v = x_v.transpose(0, 2, 1, 3, 4).reshape(b, t, c * h * w)
    m_t = jnp.matmul(r_q, r_k, precision=jax.lax.Precision.HIGHEST)
    m_t = jax.nn.softmax(m_t, axis=0)
    a_t = jnp.matmul(m_t, r_v, precision=jax.lax.Precision.HIGHEST)
    return a_t.reshape(b, t, c, h, w).transpose(0, 2, 1, 3, 4)


if __name__ == "__main__":
    key = jax.random.PRNGKey(0)
    b, c, t, h, w = 2, 8, 8, 8, 16         # small shapes; hw = 128, D = 1024
    kx, kv = jax.random.split(key)
    x = jax.random.normal(kx, (b, c, t, h, w), dtype=jnp.float32)
    x_v = jax.random.normal(kv, (b, c, t, h, w), dtype=jnp.float32)

    out = jax.block_until_ready(temporal_attention(x, x_v))
    ref = temporal_attention_ref(x, x_v)

    assert out.shape == (b, c, t, h, w), out.shape
    max_err = float(jnp.max(jnp.abs(out - ref)))
    assert jnp.allclose(out, ref, rtol=1e-3, atol=1e-3), max_err
    print("KERNEL_OK")
</pallas_src>

<mosaic_0001>
module attributes {stable_mosaic.version = 11 : i64} {
  func.func @_scores_kernel(%arg0: i32, %arg1: i32, %arg2: memref<2x8x8x128xf32, #tpu.memory_space<vmem>>, %arg3: memref<1x2x8x8xf32, #tpu.memory_space<vmem>>) attributes {dimension_semantics = [#tpu.dimension_semantics<parallel>, #tpu.dimension_semantics<arbitrary>], iteration_bounds = array<i64: 1, 1>, scalar_prefetch = 0 : i64, scratch_operands = 0 : i64, tpu.core_type = #tpu.core_type<tc>, window_params = [{transform_indices = @transform_0, window_bounds = array<i64: 2, 8, 8, 128>}, {transform_indices = @transform_1, window_bounds = array<i64: 1, 2, 8, 8>}]} {
    %c0_i32 = arith.constant 0 : i32
    %0 = arith.cmpi eq, %arg1, %c0_i32 : i32
    %1 = arith.extui %0 : i1 to i32
    %c0_i32_0 = arith.constant 0 : i32
    %2 = arith.cmpi ne, %1, %c0_i32_0 : i32
    scf.if %2 {
      %cst_41 = arith.constant 0.000000e+00 : f32
      %42 = vector.broadcast %cst_41 : f32 to vector<2x8x8xf32>
      %c0_42 = arith.constant 0 : index
      %c0_43 = arith.constant 0 : index
      %c0_44 = arith.constant 0 : index
      %c0_45 = arith.constant 0 : index
      %43 = vector.load %arg3[%c0_42, %c0_43, %c0_44, %c0_45] : memref<1x2x8x8xf32, #tpu.memory_space<vmem>>, vector<1x2x8x8xf32>
      %44 = vector.shape_cast %43 : vector<1x2x8x8xf32> to vector<2x8x8xf32>
      %45 = vector.shape_cast %42 : vector<2x8x8xf32> to vector<1x2x8x8xf32>
      tpu.vector_store %arg3[%c0_42, %c0_43, %c0_44, %c0_45], %45 {strides = array<i32>} : memref<1x2x8x8xf32, #tpu.memory_space<vmem>>, vector<1x2x8x8xf32>,
    } else {
    }
    %cst = arith.constant 0.000000e+00 : f32
    %3 = vector.broadcast %cst : f32 to vector<2x8x8xf32>
    %c0 = arith.constant 0 : index
    %c0_1 = arith.constant 0 : index
    %c0_2 = arith.constant 0 : index
    %c0_3 = arith.constant 0 : index
    %4 = vector.load %arg2[%c0, %c0_1, %c0_2, %c0_3] : memref<2x8x8x128xf32, #tpu.memory_space<vmem>>, vector<2x1x8x128xf32>
    %5 = vector.shape_cast %4 : vector<2x1x8x128xf32> to vector<2x8x128xf32>
    "tpu.trace_start"() <{level = 10 : i32, message = "bin,bjn->bij"}> : () -> ()
    %cst_4 = arith.constant dense<0.000000e+00> : vector<2x8x8xf32>
    %6 = tpu.matmul %5, %5, %cst_4 {dimension_numbers = #tpu.dot_dimension_numbers<[2], [2], [1], [1], [0, 0, 0, 1, 1, 1], [0], [0]>, precision = #tpu.contract_precision<fp32>} : vector<2x8x128xf32>, vector<2x8x128xf32>, vector<2x8x8xf32> -> vector<2x8x8xf32>
    "tpu.trace_stop"() : () -> ()
    %7 = arith.addf %3, %6 : vector<2x8x8xf32>
    %c0_5 = arith.constant 0 : index
    %c1 = arith.constant 1 : index
    %c0_6 = arith.constant 0 : index
    %c0_7 = arith.constant 0 : index
    %8 = vector.load %arg2[%c0_5, %c1, %c0_6, %c0_7] : memref<2x8x8x128xf32, #tpu.memory_space<vmem>>, vector<2x1x8x128xf32>
    %9 = vector.shape_cast %8 : vector<2x1x8x128xf32> to vector<2x8x128xf32>
    "tpu.trace_start"() <{level = 10 : i32, message = "bin,bjn->bij"}> : () -> ()
    %cst_8 = arith.constant dense<0.000000e+00> : vector<2x8x8xf32>
    %10 = tpu.matmul %9, %9, %cst_8 {dimension_numbers = #tpu.dot_dimension_numbers<[2], [2], [1], [1], [0, 0, 0, 1, 1, 1], [0], [0]>, precision = #tpu.contract_precision<fp32>} : vector<2x8x128xf32>, vector<2x8x128xf32>, vector<2x8x8xf32> -> vector<2x8x8xf32>
    "tpu.trace_stop"() : () -> ()
    %11 = arith.addf %7, %10 : vector<2x8x8xf32>
    %c0_9 = arith.constant 0 : index
    %c2 = arith.constant 2 : index
    %c0_10 = arith.constant 0 : index
    %c0_11 = arith.constant 0 : index
    %12 = vector.load %arg2[%c0_9, %c2, %c0_10, %c0_11] : memref<2x8x8x128xf32, #tpu.memory_space<vmem>>, vector<2x1x8x128xf32>
    %13 = vector.shape_cast %12 : vector<2x1x8x128xf32> to vector<2x8x128xf32>
    "tpu.trace_start"() <{level = 10 : i32, message = "bin,bjn->bij"}> : () -> ()
    %cst_12 = arith.constant dense<0.000000e+00> : vector<2x8x8xf32>
    %14 = tpu.matmul %13, %13, %cst_12 {dimension_numbers = #tpu.dot_dimension_numbers<[2], [2], [1], [1], [0, 0, 0, 1, 1, 1], [0], [0]>, precision = #tpu.contract_precision<fp32>} : vector<2x8x128xf32>, vector<2x8x128xf32>, vector<2x8x8xf32> -> vector<2x8x8xf32>
    "tpu.trace_stop"() : () -> ()
    %15 = arith.addf %11, %14 : vector<2x8x8xf32>
    %c0_13 = arith.constant 0 : index
    %c3 = arith.constant 3 : index
    %c0_14 = arith.constant 0 : index
    %c0_15 = arith.constant 0 : index
    %16 = vector.load %arg2[%c0_13, %c3, %c0_14, %c0_15] : memref<2x8x8x128xf32, #tpu.memory_space<vmem>>, vector<2x1x8x128xf32>
    %17 = vector.shape_cast %16 : vector<2x1x8x128xf32> to vector<2x8x128xf32>
    "tpu.trace_start"() <{level = 10 : i32, message = "bin,bjn->bij"}> : () -> ()
    %cst_16 = arith.constant dense<0.000000e+00> : vector<2x8x8xf32>
    %18 = tpu.matmul %17, %17, %cst_16 {dimension_numbers = #tpu.dot_dimension_numbers<[2], [2], [1], [1], [0, 0, 0, 1, 1, 1], [0], [0]>, precision = #tpu.contract_precision<fp32>} : vector<2x8x128xf32>, vector<2x8x128xf32>, vector<2x8x8xf32> -> vector<2x8x8xf32>
    "tpu.trace_stop"() : () -> ()
    %19 = arith.addf %15, %18 : vector<2x8x8xf32>
    %c0_17 = arith.constant 0 : index
    %c4 = arith.constant 4 : index
    %c0_18 = arith.constant 0 : index
    %c0_19 = arith.constant 0 : index
    %20 = vector.load %arg2[%c0_17, %c4, %c0_18, %c0_19] : memref<2x8x8x128xf32, #tpu.memory_space<vmem>>, vector<2x1x8x128xf32>
    %21 = vector.shape_cast %20 : vector<2x1x8x128xf32> to vector<2x8x128xf32>
    "tpu.trace_start"() <{level = 10 : i32, message = "bin,bjn->bij"}> : () -> ()
    %cst_20 = arith.constant dense<0.000000e+00> : vector<2x8x8xf32>
    %22 = tpu.matmul %21, %21, %cst_20 {dimension_numbers = #tpu.dot_dimension_numbers<[2], [2], [1], [1], [0, 0, 0, 1, 1, 1], [0], [0]>, precision = #tpu.contract_precision<fp32>} : vector<2x8x128xf32>, vector<2x8x128xf32>, vector<2x8x8xf32> -> vector<2x8x8xf32>
    "tpu.trace_stop"() : () -> ()
    %23 = arith.addf %19, %22 : vector<2x8x8xf32>
    %c0_21 = arith.constant 0 : index
    %c5 = arith.constant 5 : index
    %c0_22 = arith.constant 0 : index
    %c0_23 = arith.constant 0 : index
    %24 = vector.load %arg2[%c0_21, %c5, %c0_22, %c0_23] : memref<2x8x8x128xf32, #tpu.memory_space<vmem>>, vector<2x1x8x128xf32>
    %25 = vector.shape_cast %24 : vector<2x1x8x128xf32> to vector<2x8x128xf32>
    "tpu.trace_start"() <{level = 10 : i32, message = "bin,bjn->bij"}> : () -> ()
    %cst_24 = arith.constant dense<0.000000e+00> : vector<2x8x8xf32>
    %26 = tpu.matmul %25, %25, %cst_24 {dimension_numbers = #tpu.dot_dimension_numbers<[2], [2], [1], [1], [0, 0, 0, 1, 1, 1], [0], [0]>, precision = #tpu.contract_precision<fp32>} : vector<2x8x128xf32>, vector<2x8x128xf32>, vector<2x8x8xf32> -> vector<2x8x8xf32>
    "tpu.trace_stop"() : () -> ()
    %27 = arith.addf %23, %26 : vector<2x8x8xf32>
    %c0_25 = arith.constant 0 : index
    %c6 = arith.constant 6 : index
    %c0_26 = arith.constant 0 : index
    %c0_27 = arith.constant 0 : index
    %28 = vector.load %arg2[%c0_25, %c6, %c0_26, %c0_27] : memref<2x8x8x128xf32, #tpu.memory_space<vmem>>, vector<2x1x8x128xf32>
    %29 = vector.shape_cast %28 : vector<2x1x8x128xf32> to vector<2x8x128xf32>
    "tpu.trace_start"() <{level = 10 : i32, message = "bin,bjn->bij"}> : () -> ()
    %cst_28 = arith.constant dense<0.000000e+00> : vector<2x8x8xf32>
    %30 = tpu.matmul %29, %29, %cst_28 {dimension_numbers = #tpu.dot_dimension_numbers<[2], [2], [1], [1], [0, 0, 0, 1, 1, 1], [0], [0]>, precision = #tpu.contract_precision<fp32>} : vector<2x8x128xf32>, vector<2x8x128xf32>, vector<2x8x8xf32> -> vector<2x8x8xf32>
    "tpu.trace_stop"() : () -> ()
    %31 = arith.addf %27, %30 : vector<2x8x8xf32>
    %c0_29 = arith.constant 0 : index
    %c7 = arith.constant 7 : index
    %c0_30 = arith.constant 0 : index
    %c0_31 = arith.constant 0 : index
    %32 = vector.load %arg2[%c0_29, %c7, %c0_30, %c0_31] : memref<2x8x8x128xf32, #tpu.memory_space<vmem>>, vector<2x1x8x128xf32>
    %33 = vector.shape_cast %32 : vector<2x1x8x128xf32> to vector<2x8x128xf32>
    "tpu.trace_start"() <{level = 10 : i32, message = "bin,bjn->bij"}> : () -> ()
    %cst_32 = arith.constant dense<0.000000e+00> : vector<2x8x8xf32>
    %34 = tpu.matmul %33, %33, %cst_32 {dimension_numbers = #tpu.dot_dimension_numbers<[2], [2], [1], [1], [0, 0, 0, 1, 1, 1], [0], [0]>, precision = #tpu.contract_precision<fp32>} : vector<2x8x128xf32>, vector<2x8x128xf32>, vector<2x8x8xf32> -> vector<2x8x8xf32>
    "tpu.trace_stop"() : () -> ()
    %35 = arith.addf %31, %34 : vector<2x8x8xf32>
    %c0_33 = arith.constant 0 : index
    %c0_34 = arith.constant 0 : index
    %c0_35 = arith.constant 0 : index
    %c0_36 = arith.constant 0 : index
    %36 = vector.load %arg3[%c0_33, %c0_34, %c0_35, %c0_36] : memref<1x2x8x8xf32, #tpu.memory_space<vmem>>, vector<1x2x8x8xf32>
    %37 = vector.shape_cast %36 : vector<1x2x8x8xf32> to vector<2x8x8xf32>
    %38 = arith.addf %37, %35 : vector<2x8x8xf32>
    %c0_37 = arith.constant 0 : index
    %c0_38 = arith.constant 0 : index
    %c0_39 = arith.constant 0 : index
    %c0_40 = arith.constant 0 : index
    %39 = vector.load %arg3[%c0_37, %c0_38, %c0_39, %c0_40] : memref<1x2x8x8xf32, #tpu.memory_space<vmem>>, vector<1x2x8x8xf32>
    %40 = vector.shape_cast %39 : vector<1x2x8x8xf32> to vector<2x8x8xf32>
    %41 = vector.shape_cast %38 : vector<2x8x8xf32> to vector<1x2x8x8xf32>
    tpu.vector_store %arg3[%c0_37, %c0_38, %c0_39, %c0_40], %41 {strides = array<i32>} : memref<1x2x8x8xf32, #tpu.memory_space<vmem>>, vector<1x2x8x8xf32>,
    return
  }
  func.func @transform_0(%arg0: i32, %arg1: i32) -> (i32, i32, i32, i32) {
    %c0_i32 = arith.constant 0 : i32
    %c0_i32_0 = arith.constant 0 : i32
    %c0_i32_1 = arith.constant 0 : i32
    return %c0_i32, %arg1, %c0_i32_0, %arg0 : i32, i32, i32, i32
  }
  func.func @transform_1(%arg0: i32, %arg1: i32) -> (i32, i32, i32, i32) {
    %c0_i32 = arith.constant 0 : i32
    %c0_i32_0 = arith.constant 0 : i32
    %c0_i32_1 = arith.constant 0 : i32
    %c0_i32_2 = arith.constant 0 : i32
    return %arg0, %c0_i32, %c0_i32_0, %c0_i32_1 : i32, i32, i32, i32
  }
}

module attributes {stable_mosaic.version = 11 : i64} {
  func.func @_apply_kernel(%arg0: i32, %arg1: i32, %arg2: memref<2x8x8xf32, #tpu.memory_space<vmem>>, %arg3: memref<2x8x8x128xf32, #tpu.memory_space<vmem>>, %arg4: memref<2x8x8x128xf32, #tpu.memory_space<vmem>>) attributes {dimension_semantics = [#tpu.dimension_semantics<parallel>, #tpu.dimension_semantics<parallel>], iteration_bounds = array<i64: 1, 1>, scalar_prefetch = 0 : i64, scratch_operands = 0 : i64, tpu.core_type = #tpu.core_type<tc>, window_params = [{pipeline_mode = #tpu.pipeline_mode<synchronous>, transform_indices = @transform_0, window_bounds = array<i64: 2, 8, 8>}, {transform_indices = @transform_1, window_bounds = array<i64: 2, 8, 8, 128>}, {transform_indices = @transform_2, window_bounds = array<i64: 2, 8, 8, 128>}]} {
    %c0 = arith.constant 0 : index
    %c0_0 = arith.constant 0 : index
    %c0_1 = arith.constant 0 : index
    %0 = vector.load %arg2[%c0, %c0_0, %c0_1] : memref<2x8x8xf32, #tpu.memory_space<vmem>>, vector<2x8x8xf32>
    %c0_2 = arith.constant 0 : index
    %c0_3 = arith.constant 0 : index
    %c0_4 = arith.constant 0 : index
    %c0_5 = arith.constant 0 : index
    %1 = vector.load %arg3[%c0_2, %c0_3, %c0_4, %c0_5] : memref<2x8x8x128xf32, #tpu.memory_space<vmem>>, vector<2x1x8x128xf32>
    %2 = vector.shape_cast %1 : vector<2x1x8x128xf32> to vector<2x8x128xf32>
    "tpu.trace_start"() <{level = 10 : i32, message = "bij,bjn->bin"}> : () -> ()
    %cst = arith.constant dense<0.000000e+00> : vector<2x8x128xf32>
    %3 = tpu.matmul %0, %2, %cst {dimension_numbers = #tpu.dot_dimension_numbers<[2], [1], [1], [2], [0, 0, 0, 1, 1, 2], [0], [0]>, precision = #tpu.contract_precision<fp32>} : vector<2x8x8xf32>, vector<2x8x128xf32>, vector<2x8x128xf32> -> vector<2x8x128xf32>
    "tpu.trace_stop"() : () -> ()
    %c0_6 = arith.constant 0 : index
    %c0_7 = arith.constant 0 : index
    %c0_8 = arith.constant 0 : index
    %c0_9 = arith.constant 0 : index
    %4 = vector.load %arg4[%c0_6, %c0_7, %c0_8, %c0_9] : memref<2x8x8x128xf32, #tpu.memory_space<vmem>>, vector<2x1x8x128xf32>
    %5 = vector.shape_cast %4 : vector<2x1x8x128xf32> to vector<2x8x128xf32>
    %6 = vector.shape_cast %3 : vector<2x8x128xf32> to vector<2x1x8x128xf32>
    tpu.vector_store %arg4[%c0_6, %c0_7, %c0_8, %c0_9], %6 {strides = array<i32>} : memref<2x8x8x128xf32, #tpu.memory_space<vmem>>, vector<2x1x8x128xf32>,
    %c0_10 = arith.constant 0 : index
    %c1 = arith.constant 1 : index
    %c0_11 = arith.constant 0 : index
    %c0_12 = arith.constant 0 : index
    %7 = vector.load %arg3[%c0_10, %c1, %c0_11, %c0_12] : memref<2x8x8x128xf32, #tpu.memory_space<vmem>>, vector<2x1x8x128xf32>
    %8 = vector.shape_cast %7 : vector<2x1x8x128xf32> to vector<2x8x128xf32>
    "tpu.trace_start"() <{level = 10 : i32, message = "bij,bjn->bin"}> : () -> ()
    %cst_13 = arith.constant dense<0.000000e+00> : vector<2x8x128xf32>
    %9 = tpu.matmul %0, %8, %cst_13 {dimension_numbers = #tpu.dot_dimension_numbers<[2], [1], [1], [2], [0, 0, 0, 1, 1, 2], [0], [0]>, precision = #tpu.contract_precision<fp32>} : vector<2x8x8xf32>, vector<2x8x128xf32>, vector<2x8x128xf32> -> vector<2x8x128xf32>
    "tpu.trace_stop"() : () -> ()
    %c0_14 = arith.constant 0 : index
    %c1_15 = arith.constant 1 : index
    %c0_16 = arith.constant 0 : index
    %c0_17 = arith.constant 0 : index
    %10 = vector.load %arg4[%c0_14, %c1_15, %c0_16, %c0_17] : memref<2x8x8x128xf32, #tpu.memory_space<vmem>>, vector<2x1x8x128xf32>
    %11 = vector.shape_cast %10 : vector<2x1x8x128xf32> to vector<2x8x128xf32>
    %12 = vector.shape_cast %9 : vector<2x8x128xf32> to vector<2x1x8x128xf32>
    tpu.vector_store %arg4[%c0_14, %c1_15, %c0_16, %c0_17], %12 {strides = array<i32>} : memref<2x8x8x128xf32, #tpu.memory_space<vmem>>, vector<2x1x8x128xf32>,
    %c0_18 = arith.constant 0 : index
    %c2 = arith.constant 2 : index
    %c0_19 = arith.constant 0 : index
    %c0_20 = arith.constant 0 : index
    %13 = vector.load %arg3[%c0_18, %c2, %c0_19, %c0_20] : memref<2x8x8x128xf32, #tpu.memory_space<vmem>>, vector<2x1x8x128xf32>
    %14 = vector.shape_cast %13 : vector<2x1x8x128xf32> to vector<2x8x128xf32>
    "tpu.trace_start"() <{level = 10 : i32, message = "bij,bjn->bin"}> : () -> ()
    %cst_21 = arith.constant dense<0.000000e+00> : vector<2x8x128xf32>
    %15 = tpu.matmul %0, %14, %cst_21 {dimension_numbers = #tpu.dot_dimension_numbers<[2], [1], [1], [2], [0, 0, 0, 1, 1, 2], [0], [0]>, precision = #tpu.contract_precision<fp32>} : vector<2x8x8xf32>, vector<2x8x128xf32>, vector<2x8x128xf32> -> vector<2x8x128xf32>
    "tpu.trace_stop"() : () -> ()
    %c0_22 = arith.constant 0 : index
    %c2_23 = arith.constant 2 : index
    %c0_24 = arith.constant 0 : index
    %c0_25 = arith.constant 0 : index
    %16 = vector.load %arg4[%c0_22, %c2_23, %c0_24, %c0_25] : memref<2x8x8x128xf32, #tpu.memory_space<vmem>>, vector<2x1x8x128xf32>
    %17 = vector.shape_cast %16 : vector<2x1x8x128xf32> to vector<2x8x128xf32>
    %18 = vector.shape_cast %15 : vector<2x8x128xf32> to vector<2x1x8x128xf32>
    tpu.vector_store %arg4[%c0_22, %c2_23, %c0_24, %c0_25], %18 {strides = array<i32>} : memref<2x8x8x128xf32, #tpu.memory_space<vmem>>, vector<2x1x8x128xf32>,
    %c0_26 = arith.constant 0 : index
    %c3 = arith.constant 3 : index
    %c0_27 = arith.constant 0 : index
    %c0_28 = arith.constant 0 : index
    %19 = vector.load %arg3[%c0_26, %c3, %c0_27, %c0_28] : memref<2x8x8x128xf32, #tpu.memory_space<vmem>>, vector<2x1x8x128xf32>
    %20 = vector.shape_cast %19 : vector<2x1x8x128xf32> to vector<2x8x128xf32>
    "tpu.trace_start"() <{level = 10 : i32, message = "bij,bjn->bin"}> : () -> ()
    %cst_29 = arith.constant dense<0.000000e+00> : vector<2x8x128xf32>
    %21 = tpu.matmul %0, %20, %cst_29 {dimension_numbers = #tpu.dot_dimension_numbers<[2], [1], [1], [2], [0, 0, 0, 1, 1, 2], [0], [0]>, precision = #tpu.contract_precision<fp32>} : vector<2x8x8xf32>, vector<2x8x128xf32>, vector<2x8x128xf32> -> vector<2x8x128xf32>
    "tpu.trace_stop"() : () -> ()
    %c0_30 = arith.constant 0 : index
    %c3_31 = arith.constant 3 : index
    %c0_32 = arith.constant 0 : index
    %c0_33 = arith.constant 0 : index
    %22 = vector.load %arg4[%c0_30, %c3_31, %c0_32, %c0_33] : memref<2x8x8x128xf32, #tpu.memory_space<vmem>>, vector<2x1x8x128xf32>
    %23 = vector.shape_cast %22 : vector<2x1x8x128xf32> to vector<2x8x128xf32>
    %24 = vector.shape_cast %21 : vector<2x8x128xf32> to vector<2x1x8x128xf32>
    tpu.vector_store %arg4[%c0_30, %c3_31, %c0_32, %c0_33], %24 {strides = array<i32>} : memref<2x8x8x128xf32, #tpu.memory_space<vmem>>, vector<2x1x8x128xf32>,
    %c0_34 = arith.constant 0 : index
    %c4 = arith.constant 4 : index
    %c0_35 = arith.constant 0 : index
    %c0_36 = arith.constant 0 : index
    %25 = vector.load %arg3[%c0_34, %c4, %c0_35, %c0_36] : memref<2x8x8x128xf32, #tpu.memory_space<vmem>>, vector<2x1x8x128xf32>
    %26 = vector.shape_cast %25 : vector<2x1x8x128xf32> to vector<2x8x128xf32>
    "tpu.trace_start"() <{level = 10 : i32, message = "bij,bjn->bin"}> : () -> ()
    %cst_37 = arith.constant dense<0.000000e+00> : vector<2x8x128xf32>
    %27 = tpu.matmul %0, %26, %cst_37 {dimension_numbers = #tpu.dot_dimension_numbers<[2], [1], [1], [2], [0, 0, 0, 1, 1, 2], [0], [0]>, precision = #tpu.contract_precision<fp32>} : vector<2x8x8xf32>, vector<2x8x128xf32>, vector<2x8x128xf32> -> vector<2x8x128xf32>
    "tpu.trace_stop"() : () -> ()
    %c0_38 = arith.constant 0 : index
    %c4_39 = arith.constant 4 : index
    %c0_40 = arith.constant 0 : index
    %c0_41 = arith.constant 0 : index
    %28 = vector.load %arg4[%c0_38, %c4_39, %c0_40, %c0_41] : memref<2x8x8x128xf32, #tpu.memory_space<vmem>>, vector<2x1x8x128xf32>
    %29 = vector.shape_cast %28 : vector<2x1x8x128xf32> to vector<2x8x128xf32>
    %30 = vector.shape_cast %27 : vector<2x8x128xf32> to vector<2x1x8x128xf32>
    tpu.vector_store %arg4[%c0_38, %c4_39, %c0_40, %c0_41], %30 {strides = array<i32>} : memref<2x8x8x128xf32, #tpu.memory_space<vmem>>, vector<2x1x8x128xf32>,
    %c0_42 = arith.constant 0 : index
    %c5 = arith.constant 5 : index
    %c0_43 = arith.constant 0 : index
    %c0_44 = arith.constant 0 : index
    %31 = vector.load %arg3[%c0_42, %c5, %c0_43, %c0_44] : memref<2x8x8x128xf32, #tpu.memory_space<vmem>>, vector<2x1x8x128xf32>
    %32 = vector.shape_cast %31 : vector<2x1x8x128xf32> to vector<2x8x128xf32>
    "tpu.trace_start"() <{level = 10 : i32, message = "bij,bjn->bin"}> : () -> ()
    %cst_45 = arith.constant dense<0.000000e+00> : vector<2x8x128xf32>
    %33 = tpu.matmul %0, %32, %cst_45 {dimension_numbers = #tpu.dot_dimension_numbers<[2], [1], [1], [2], [0, 0, 0, 1, 1, 2], [0], [0]>, precision = #tpu.contract_precision<fp32>} : vector<2x8x8xf32>, vector<2x8x128xf32>, vector<2x8x128xf32> -> vector<2x8x128xf32>
    "tpu.trace_stop"() : () -> ()
    %c0_46 = arith.constant 0 : index
    %c5_47 = arith.constant 5 : index
    %c0_48 = arith.constant 0 : index
    %c0_49 = arith.constant 0 : index
    %34 = vector.load %arg4[%c0_46, %c5_47, %c0_48, %c0_49] : memref<2x8x8x128xf32, #tpu.memory_space<vmem>>, vector<2x1x8x128xf32>
    %35 = vector.shape_cast %34 : vector<2x1x8x128xf32> to vector<2x8x128xf32>
    %36 = vector.shape_cast %33 : vector<2x8x128xf32> to vector<2x1x8x128xf32>
    tpu.vector_store %arg4[%c0_46, %c5_47, %c0_48, %c0_49], %36 {strides = array<i32>} : memref<2x8x8x128xf32, #tpu.memory_space<vmem>>, vector<2x1x8x128xf32>,
    %c0_50 = arith.constant 0 : index
    %c6 = arith.constant 6 : index
    %c0_51 = arith.constant 0 : index
    %c0_52 = arith.constant 0 : index
    %37 = vector.load %arg3[%c0_50, %c6, %c0_51, %c0_52] : memref<2x8x8x128xf32, #tpu.memory_space<vmem>>, vector<2x1x8x128xf32>
    %38 = vector.shape_cast %37 : vector<2x1x8x128xf32> to vector<2x8x128xf32>
    "tpu.trace_start"() <{level = 10 : i32, message = "bij,bjn->bin"}> : () -> ()
    %cst_53 = arith.constant dense<0.000000e+00> : vector<2x8x128xf32>
    %39 = tpu.matmul %0, %38, %cst_53 {dimension_numbers = #tpu.dot_dimension_numbers<[2], [1], [1], [2], [0, 0, 0, 1, 1, 2], [0], [0]>, precision = #tpu.contract_precision<fp32>} : vector<2x8x8xf32>, vector<2x8x128xf32>, vector<2x8x128xf32> -> vector<2x8x128xf32>
    "tpu.trace_stop"() : () -> ()
    %c0_54 = arith.constant 0 : index
    %c6_55 = arith.constant 6 : index
    %c0_56 = arith.constant 0 : index
    %c0_57 = arith.constant 0 : index
    %40 = vector.load %arg4[%c0_54, %c6_55, %c0_56, %c0_57] : memref<2x8x8x128xf32, #tpu.memory_space<vmem>>, vector<2x1x8x128xf32>
    %41 = vector.shape_cast %40 : vector<2x1x8x128xf32> to vector<2x8x128xf32>
    %42 = vector.shape_cast %39 : vector<2x8x128xf32> to vector<2x1x8x128xf32>
    tpu.vector_store %arg4[%c0_54, %c6_55, %c0_56, %c0_57], %42 {strides = array<i32>} : memref<2x8x8x128xf32, #tpu.memory_space<vmem>>, vector<2x1x8x128xf32>,
    %c0_58 = arith.constant 0 : index
    %c7 = arith.constant 7 : index
    %c0_59 = arith.constant 0 : index
    %c0_60 = arith.constant 0 : index
    %43 = vector.load %arg3[%c0_58, %c7, %c0_59, %c0_60] : memref<2x8x8x128xf32, #tpu.memory_space<vmem>>, vector<2x1x8x128xf32>
    %44 = vector.shape_cast %43 : vector<2x1x8x128xf32> to vector<2x8x128xf32>
    "tpu.trace_start"() <{level = 10 : i32, message = "bij,bjn->bin"}> : () -> ()
    %cst_61 = arith.constant dense<0.000000e+00> : vector<2x8x128xf32>
    %45 = tpu.matmul %0, %44, %cst_61 {dimension_numbers = #tpu.dot_dimension_numbers<[2], [1], [1], [2], [0, 0, 0, 1, 1, 2], [0], [0]>, precision = #tpu.contract_precision<fp32>} : vector<2x8x8xf32>, vector<2x8x128xf32>, vector<2x8x128xf32> -> vector<2x8x128xf32>
    "tpu.trace_stop"() : () -> ()
    %c0_62 = arith.constant 0 : index
    %c7_63 = arith.constant 7 : index
    %c0_64 = arith.constant 0 : index
    %c0_65 = arith.constant 0 : index
    %46 = vector.load %arg4[%c0_62, %c7_63, %c0_64, %c0_65] : memref<2x8x8x128xf32, #tpu.memory_space<vmem>>, vector<2x1x8x128xf32>
    %47 = vector.shape_cast %46 : vector<2x1x8x128xf32> to vector<2x8x128xf32>
    %48 = vector.shape_cast %45 : vector<2x8x128xf32> to vector<2x1x8x128xf32>
    tpu.vector_store %arg4[%c0_62, %c7_63, %c0_64, %c0_65], %48 {strides = array<i32>} : memref<2x8x8x128xf32, #tpu.memory_space<vmem>>, vector<2x1x8x128xf32>,
    return
  }
  func.func @transform_0(%arg0: i32, %arg1: i32) -> (i32, i32, i32) {
    %c0_i32 = arith.constant 0 : i32
    %c0_i32_0 = arith.constant 0 : i32
    %c0_i32_1 = arith.constant 0 : i32
    %c0_i32_2 = arith.constant 0 : i32
    return %c0_i32, %c0_i32_0, %c0_i32_1 : i32, i32, i32
  }
  func.func @transform_1(%arg0: i32, %arg1: i32) -> (i32, i32, i32, i32) {
    %c0_i32 = arith.constant 0 : i32
    %c0_i32_0 = arith.constant 0 : i32
    %c0_i32_1 = arith.constant 0 : i32
    return %c0_i32, %arg0, %c0_i32_0, %arg1 : i32, i32, i32, i32
  }
  func.func @transform_2(%arg0: i32, %arg1: i32) -> (i32, i32, i32, i32) {
    %c0_i32 = arith.constant 0 : i32
    %c0_i32_0 = arith.constant 0 : i32
    %c0_i32_1 = arith.constant 0 : i32
    return %c0_i32, %arg0, %c0_i32_0, %arg1 : i32, i32, i32, i32
  }
}

</mosaic_0001>

<bundles_post_ra>
// kernel: temporal_attention.2
= control target key start
LH: loop header
LB: loop body
LE: loop exit
PB: predicated region body
PF: predicated region fallthrough
CT: control target
= control target key end

     0   :  { %v7885_v0 = vmov 0.0   ;;  %vm7886_vm0 = vmmov 0   ;;  %vm12_vm1 = vcmask 64512   ;;  %s8386_s0 = inlined_call_operand.vmem [shape: f32[2,8,8,128], index: 0, kind: input, shape index: {}]   ;;  %s8387_s1 = inlined_call_operand.vmem [shape: f32[1,2,8,8], index: 1, kind: output, shape index: {}]  }
   0x1   :  { %7403 = vmatprep.subr.mxu0 %v7885_v0  ;;  %v7197_v1 = vld [vmem:[%s8386_s0 + $0x8] sm:$0xff]  ;;  %7405 = vmatprep.mubr.msk.f32.mxu0 %vm7886_vm0, %v7885_v0  ;;  %v15_v11 = vld [vmem:[%s8386_s0] sm:$0xff]  ;;  %v7199_v23 = vld [vmem:[%s8386_s0 + $0x10] sm:$0xff]  ;;  %13 = vst.msk [vmem:[%s8387_s1] sm:$0xff] %vm12_vm1, %v7885_v0 }
   0x2   :  { %v7198_v2 = vld [vmem:[%s8386_s0 + $0x48] sm:$0xff]  ;;  %v51_v3 = vand.u32 4294901760, %v7197_v1  ;;  %7408 = vmatprep.subr.mxu1 %v7885_v0  ;;  %7410 = vmatprep.mubr.msk.f32.mxu1 %vm7886_vm0, %v7885_v0  ;;  %v7917_v13 = vand.u32 4294901760, %v15_v11  ;;  %v16_v17 = vld [vmem:[%s8386_s0 + $0x40] sm:$0xff]  ;;  %v7968_v25 = vand.u32 4294901760, %v7199_v23  ;;  %v7200_v29 = vld [vmem:[%s8386_s0 + $0x50] sm:$0xff] }
   0x3   :  { %v497_v5 = vand.u32 4294901760, %v7198_v2  ;;  %v7941_v19 = vand.u32 4294901760, %v16_v17  ;;  %v7998_v31 = vand.u32 4294901760, %v7200_v29  ;;  %v7201_v35 = vld [vmem:[%s8386_s0 + $0x18] sm:$0xff]  ;;  %v7203_v47 = vld [vmem:[%s8386_s0 + $0x20] sm:$0xff]  ;;  %v7205_v59 = vld [vmem:[%s8386_s0 + $0x28] sm:$0xff] }
   0x4   :  { %7404 = vmatpush3.xpose.msra.mxu0 %v51_v3  ;;  %v87_v4 = vsub.f32 %v7197_v1, %v51_v3  ;;  %v979_v15 = vsub.f32 %v15_v11, %v7917_v13  ;;  %v1874_v27 = vsub.f32 %v7199_v23, %v7968_v25  ;;  %v8028_v37 = vand.u32 4294901760, %v7201_v35  ;;  %v7202_v41 = vld [vmem:[%s8386_s0 + $0x58] sm:$0xff]  ;;  %v7204_v53 = vld [vmem:[%s8386_s0 + $0x60] sm:$0xff]  ;;  %14 = vst.msk [vmem:[%s8387_s1 + $0x8] sm:$0xff] %vm12_vm1, %v7885_v0 }
   0x5   :  { %7413 = vmatprep.subr.mxu0 %v7885_v0  ;;  %v533_v8 = vsub.f32 %v7198_v2, %v497_v5  ;;  %v1425_v21 = vsub.f32 %v16_v17, %v7941_v19  ;;  %v2320_v33 = vsub.f32 %v7200_v29, %v7998_v31  ;;  %v8058_v43 = vand.u32 4294901760, %v7202_v41  ;;  %v7206_v2 = vld [vmem:[%s8386_s0 + $0x68] sm:$0xff] }
   0x6   :  { %v88_v6 = vand.u32 4294901760, %v87_v4  ;;  %v980_v16 = vand.u32 4294901760, %v979_v15  ;;  %v1875_v28 = vand.u32 4294901760, %v1874_v27  ;;  %v2771_v39 = vsub.f32 %v7201_v35, %v8028_v37 }
   0x7   :  { %v534_v10 = vand.u32 4294901760, %v533_v8  ;;  %v1426_v22 = vand.u32 4294901760, %v1425_v21  ;;  %v2321_v34 = vand.u32 4294901760, %v2320_v33  ;;  %v3217_v45 = vsub.f32 %v7202_v41, %v8058_v43 }
   0x8   :  { %v89_v7 = vsub.f32 %v87_v4, %v88_v6  ;;  %v981_v18 = vsub.f32 %v979_v15, %v980_v16  ;;  %v1876_v30 = vsub.f32 %v1874_v27, %v1875_v28  ;;  %v2772_v40 = vand.u32 4294901760, %v2771_v39 }
   0x9   :  { %v535_v12 = vsub.f32 %v533_v8, %v534_v10  ;;  %v1427_v24 = vsub.f32 %v1425_v21, %v1426_v22  ;;  %v2322_v36 = vsub.f32 %v2320_v33, %v2321_v34  ;;  %v3218_v46 = vand.u32 4294901760, %v3217_v45 }
   0xa   :  { %v90_v9 = vand.u32 4294901760, %v89_v7  ;;  %v982_v20 = vand.u32 4294901760, %v981_v18  ;;  %v1877_v32 = vand.u32 4294901760, %v1876_v30  ;;  %v2773_v42 = vsub.f32 %v2771_v39, %v2772_v40 }
   0xb   :  { %v536_v14 = vand.u32 4294901760, %v535_v12  ;;  %v1428_v26 = vand.u32 4294901760, %v1427_v24  ;;  %v2323_v38 = vand.u32 4294901760, %v2322_v36  ;;  %v3219_v48 = vsub.f32 %v3217_v45, %v3218_v46 }
   0xc   :  { %7406 = vmatmul.mubr.f32.vlgmr.msra.gmra.mxu0 %v90_v9  ;;  %7409 = vmatpush3.xpose.msra.mxu1 %v90_v9  ;;  %v2774_v44 = vand.u32 4294901760, %v2773_v42  ;;  %v8088_v49 = vand.u32 4294901760, %v7203_v47  ;;  %v8118_v55 = vand.u32 4294901760, %v7204_v53  ;;  %v8148_v61 = vand.u32 4294901760, %v7205_v59 }
   0xd   :  { %7414 = vmatpush3.xpose.msra.mxu0 %v87_v4  ;;  %7415 = vmatprep.mubr.msk.f32.mxu0 %vm7886_vm0, %v7885_v0  ;;  %v3220_v50 = vand.u32 4294901760, %v3219_v48 }
   0xe   :  { %7418 = vmatprep.subr.mxu1 %v7885_v0  ;;  %7423 = vmatprep.subr.mxu0 %v7885_v0  ;;  %v3668_v51 = vsub.f32 %v7203_v47, %v8088_v49  ;;  %v4114_v57 = vsub.f32 %v7204_v53, %v8118_v55  ;;  %v4565_v63 = vsub.f32 %v7205_v59, %v8148_v61 }
   0xf   :  { %7411 = vmatmul.mubr.f32.vlgmr.msra.gmra.mxu1 %v51_v3 }
  0x10   :  { %7416 = vmatmul.mubr.f32.vlgmr.msra.gmra.mxu0 %v87_v4  ;;  %7419 = vmatpush3.xpose.msra.mxu1 %v51_v3  ;;  %v3669_v52 = vand.u32 4294901760, %v3668_v51  ;;  %v4115_v58 = vand.u32 4294901760, %v4114_v57  ;;  %v4566_v1 = vand.u32 4294901760, %v4565_v63  ;;  %v8178_v4 = vand.u32 4294901760, %v7206_v2 }
  0x11   :  { %7424 = vmatpush3.xpose.msra.mxu0 %v88_v6  ;;  %7420 = vmatprep.mubr.msk.f32.mxu1 %vm7886_vm0, %v7885_v0 }
  0x12   :  { %7425 = vmatprep.mubr.msk.f32.mxu0 %vm7886_vm0, %v7885_v0  ;;  %7428 = vmatprep.subr.mxu1 %v7885_v0  ;;  %v3670_v54 = vsub.f32 %v3668_v51, %v3669_v52  ;;  %v4116_v60 = vsub.f32 %v4114_v57, %v4115_v58 }
  0x13   :  { %7421 = vmatmul.mubr.f32.vlgmr.msra.gmra.mxu1 %v88_v6  ;;  %7433 = vmatprep.subr.mxu0 %v7885_v0  ;;  %v5011_v6 = vsub.f32 %v7206_v2, %v8178_v4 }
  0x14   :  { %7426 = vmatmul.mubr.f32.vlgmr.msra.gmra.mxu0 %v51_v3  ;;  %7429 = vmatpush3.xpose.msra.mxu1 %v51_v3  ;;  %v3671_v56 = vand.u32 4294901760, %v3670_v54  ;;  %v4117_v62 = vand.u32 4294901760, %v4116_v60 }
  0x15   :  { %7434 = vmatpush3.xpose.msra.mxu0 %v497_v5  ;;  %7430 = vmatprep.mubr.msk.f32.mxu1 %vm7886_vm0, %v7885_v0  ;;  %v5012_v7 = vand.u32 4294901760, %v5011_v6 }
  0x16   :  { %7435 = vmatprep.mubr.msk.f32.mxu0 %vm7886_vm0, %v7885_v0  ;;  %7438 = vmatprep.subr.mxu1 %v7885_v0 }
  0x17   :  { %7431 = vmatmul.mubr.f32.vlgmr.msra.gmra.mxu1 %v51_v3  ;;  %7443 = vmatprep.subr.mxu0 %v7885_v0  ;;  %v4567_v3 = vsub.f32 %v4565_v63, %v4566_v1  ;;  %v5013_v9 = vsub.f32 %v5011_v6, %v5012_v7 }
  0x18   :  { %7436 = vmatmul.mubr.f32.vlgmr.msra.gmra.mxu0 %v536_v14  ;;  %7439 = vmatpush3.xpose.msra.mxu1 %v536_v14  ;;  %v7208_v14 = vld [vmem:[%s8386_s0 + $0x70] sm:$0xff] }
  0x19   :  { %7444 = vmatpush3.xpose.msra.mxu0 %v533_v8  ;;  %7440 = vmatprep.mubr.msk.f32.mxu1 %vm7886_vm0, %v7885_v0  ;;  %v5014_v11 = vand.u32 4294901760, %v5013_v9 }
  0x1a   :  { %7445 = vmatprep.mubr.msk.f32.mxu0 %vm7886_vm0, %v7885_v0  ;;  %7448 = vmatprep.subr.mxu1 %v7885_v0 }
  0x1b   :  { %7441 = vmatmul.mubr.f32.vlgmr.msra.gmra.mxu1 %v497_v5  ;;  %7453 = vmatprep.subr.mxu0 %v7885_v0 }
  0x1c   :  { %7446 = vmatmul.mubr.f32.vlgmr.msra.gmra.mxu0 %v533_v8  ;;  %7449 = vmatpush3.xpose.msra.mxu1 %v497_v5  ;;  %v7207_v8 = vld [vmem:[%s8386_s0 + $0x30] sm:$0xff] }
  0x1d   :  { %7454 = vmatpush3.xpose.msra.mxu0 %v534_v10  ;;  %7450 = vmatprep.mubr.msk.f32.mxu1 %vm7886_vm0, %v7885_v0 }
  0x1e   :  { %7455 = vmatprep.mubr.msk.f32.mxu0 %vm7886_vm0, %v7885_v0  ;;  %7458 = vmatprep.subr.mxu1 %v7885_v0 }
  0x1f   :  { %7451 = vmatmul.mubr.f32.vlgmr.msra.gmra.mxu1 %v534_v10  ;;  %7463 = vmatprep.subr.mxu0 %v7885_v0  ;;  %v8208_v10 = vand.u32 4294901760, %v7207_v8 }
  0x20   :  { %7456 = vmatmul.mubr.f32.vlgmr.msra.gmra.mxu0 %v497_v5  ;;  %7459 = vmatpush3.xpose.msra.mxu1 %v497_v5 }
  0x21   :  { %7464 = vmatpush3.xpose.msra.mxu0 %v7917_v13  ;;  %7460 = vmatprep.mubr.msk.f32.mxu1 %vm7886_vm0, %v7885_v0  ;;  %v5462_v12 = vsub.f32 %v7207_v8, %v8208_v10 }
  0x22   :  { %7465 = vmatprep.mubr.msk.f32.mxu0 %vm7886_vm0, %v7885_v0  ;;  %7468 = vmatprep.subr.mxu1 %v7885_v0 }
  0x23   :  { %7461 = vmatmul.mubr.f32.vlgmr.msra.gmra.mxu1 %v497_v5  ;;  %7473 = vmatprep.subr.mxu0 %v7885_v0  ;;  %v4568_v5 = vand.u32 4294901760, %v4567_v3 }
  0x24   :  { %7466 = vmatmul.mubr.f32.vlgmr.msra.gmra.mxu0 %v982_v20  ;;  %7469 = vmatpush3.xpose.msra.mxu1 %v982_v20  ;;  %v7209_v20 = vld [vmem:[%s8386_s0 + $0x38] sm:$0xff] }
  0x25   :  { %7474 = vmatpush3.xpose.msra.mxu0 %v979_v15  ;;  %7470 = vmatprep.mubr.msk.f32.mxu1 %vm7886_vm0, %v7885_v0 }
  0x26   :  { %7475 = vmatprep.mubr.msk.f32.mxu0 %vm7886_vm0, %v7885_v0  ;;  %7478 = vmatprep.subr.mxu1 %v7885_v0 }
  0x27   :  { %7471 = vmatmul.mubr.f32.vlgmr.msra.gmra.mxu1 %v7917_v13  ;;  %7483 = vmatprep.subr.mxu0 %v7885_v0 }
  0x28   :  { %7476 = vmatmul.mubr.f32.vlgmr.msra.gmra.mxu0 %v979_v15  ;;  %7479 = vmatpush3.xpose.msra.mxu1 %v7917_v13 }
  0x29   :  { %7484 = vmatpush3.xpose.msra.mxu0 %v980_v16  ;;  %7480 = vmatprep.mubr.msk.f32.mxu1 %vm7886_vm0, %v7885_v0 }
  0x2a   :  { %7485 = vmatprep.mubr.msk.f32.mxu0 %vm7886_vm0, %v7885_v0  ;;  %7488 = vmatprep.subr.mxu1 %v7885_v0 }
  0x2b   :  { %7481 = vmatmul.mubr.f32.vlgmr.msra.gmra.mxu1 %v980_v16  ;;  %7493 = vmatprep.subr.mxu0 %v7885_v0  ;;  %v8238_v16 = vand.u32 4294901760, %v7208_v14 }
  0x2c   :  { %7486 = vmatmul.mubr.f32.vlgmr.msra.gmra.mxu0 %v7917_v13  ;;  %7489 = vmatpush3.xpose.msra.mxu1 %v7917_v13 }
  0x2d   :  { %7494 = vmatpush3.xpose.msra.mxu0 %v7941_v19  ;;  %7490 = vmatprep.mubr.msk.f32.mxu1 %vm7886_vm0, %v7885_v0  ;;  %v5908_v18 = vsub.f32 %v7208_v14, %v8238_v16 }
  0x2e   :  { %7495 = vmatprep.mubr.msk.f32.mxu0 %vm7886_vm0, %v7885_v0  ;;  %7498 = vmatprep.subr.mxu1 %v7885_v0 }
  0x2f   :  { %7491 = vmatmul.mubr.f32.vlgmr.msra.gmra.mxu1 %v7917_v13  ;;  %7503 = vmatprep.subr.mxu0 %v7885_v0  ;;  %v5463_v13 = vand.u32 4294901760, %v5462_v12 }
  0x30   :  { %7496 = vmatmul.mubr.f32.vlgmr.msra.gmra.mxu0 %v1428_v26  ;;  %7499 = vmatpush3.xpose.msra.mxu1 %v1428_v26  ;;  %v7210_v26 = vld [vmem:[%s8386_s0 + $0x78] sm:$0xff] }
  0x31   :  { %7504 = vmatpush3.xpose.msra.mxu0 %v1425_v21  ;;  %7500 = vmatprep.mubr.msk.f32.mxu1 %vm7886_vm0, %v7885_v0  ;;  %v5464_v15 = vsub.f32 %v5462_v12, %v5463_v13 }
  0x32   :  { %7505 = vmatprep.mubr.msk.f32.mxu0 %vm7886_vm0, %v7885_v0  ;;  %7508 = vmatprep.subr.mxu1 %v7885_v0 }
  0x33   :  { %7501 = vmatmul.mubr.f32.vlgmr.msra.gmra.mxu1 %v7941_v19  ;;  %7513 = vmatprep.subr.mxu0 %v7885_v0  ;;  %v5465_v17 = vand.u32 4294901760, %v5464_v15 }
  0x34   :  { %7506 = vmatmul.mubr.f32.vlgmr.msra.gmra.mxu0 %v1425_v21  ;;  %7509 = vmatpush3.xpose.msra.mxu1 %v7941_v19 }
  0x35   :  { %7514 = vmatpush3.xpose.msra.mxu0 %v1426_v22  ;;  %7510 = vmatprep.mubr.msk.f32.mxu1 %vm7886_vm0, %v7885_v0 }
  0x36   :  { %7515 = vmatprep.mubr.msk.f32.mxu0 %vm7886_vm0, %v7885_v0  ;;  %7518 = vmatprep.subr.mxu1 %v7885_v0 }
  0x37   :  { %7511 = vmatmul.mubr.f32.vlgmr.msra.gmra.mxu1 %v1426_v22  ;;  %7523 = vmatprep.subr.mxu0 %v7885_v0  ;;  %v8268_v22 = vand.u32 4294901760, %v7209_v20 }
  0x38   :  { %7516 = vmatmul.mubr.f32.vlgmr.msra.gmra.mxu0 %v7941_v19  ;;  %7519 = vmatpush3.xpose.msra.mxu1 %v7941_v19 }
  0x39   :  { %7524 = vmatpush3.xpose.msra.mxu0 %v7968_v25  ;;  %7520 = vmatprep.mubr.msk.f32.mxu1 %vm7886_vm0, %v7885_v0  ;;  %v6359_v24 = vsub.f32 %v7209_v20, %v8268_v22 }
  0x3a   :  { %7525 = vmatprep.mubr.msk.f32.mxu0 %vm7886_vm0, %v7885_v0  ;;  %7528 = vmatprep.subr.mxu1 %v7885_v0 }
  0x3b   :  { %7521 = vmatmul.mubr.f32.vlgmr.msra.gmra.mxu1 %v7941_v19  ;;  %7533 = vmatprep.subr.mxu0 %v7885_v0  ;;  %v5909_v19 = vand.u32 4294901760, %v5908_v18 }
  0x3c   :  { %7526 = vmatmul.mubr.f32.vlgmr.msra.gmra.mxu0 %v1877_v32  ;;  %7529 = vmatpush3.xpose.msra.mxu1 %v1877_v32 }
  0x3d   :  { %7534 = vmatpush3.xpose.msra.mxu0 %v1874_v27  ;;  %7530 = vmatprep.mubr.msk.f32.mxu1 %vm7886_vm0, %v7885_v0  ;;  %v5910_v21 = vsub.f32 %v5908_v18, %v5909_v19 }
  0x3e   :  { %7535 = vmatprep.mubr.msk.f32.mxu0 %vm7886_vm0, %v7885_v0  ;;  %7538 = vmatprep.subr.mxu1 %v7885_v0 }
  0x3f   :  { %7531 = vmatmul.mubr.f32.vlgmr.msra.gmra.mxu1 %v7968_v25  ;;  %7543 = vmatprep.subr.mxu0 %v7885_v0  ;;  %v5911_v23 = vand.u32 4294901760, %v5910_v21 }
  0x40   :  { %7536 = vmatmul.mubr.f32.vlgmr.msra.gmra.mxu0 %v1874_v27  ;;  %7539 = vmatpush3.xpose.msra.mxu1 %v7968_v25 }
  0x41   :  { %7544 = vmatpush3.xpose.msra.mxu0 %v1875_v28  ;;  %7540 = vmatprep.mubr.msk.f32.mxu1 %vm7886_vm0, %v7885_v0 }
  0x42   :  { %7545 = vmatprep.mubr.msk.f32.mxu0 %vm7886_vm0, %v7885_v0  ;;  %7548 = vmatprep.subr.mxu1 %v7885_v0 }
  0x43   :  { %7541 = vmatmul.mubr.f32.vlgmr.msra.gmra.mxu1 %v1875_v28  ;;  %7553 = vmatprep.subr.mxu0 %v7885_v0  ;;  %v6769_v28 = vand.u32 4294901760, %v7210_v26 }
  0x44   :  { %7546 = vmatmul.mubr.f32.vlgmr.msra.gmra.mxu0 %v7968_v25  ;;  %7549 = vmatpush3.xpose.msra.mxu1 %v7968_v25 }
  0x45   :  { %7554 = vmatpush3.xpose.msra.mxu0 %v7998_v31  ;;  %7550 = vmatprep.mubr.msk.f32.mxu1 %vm7886_vm0, %v7885_v0  ;;  %v6805_v30 = vsub.f32 %v7210_v26, %v6769_v28 }
  0x46   :  { %7555 = vmatprep.mubr.msk.f32.mxu0 %vm7886_vm0, %v7885_v0  ;;  %7558 = vmatprep.subr.mxu1 %v7885_v0 }
  0x47   :  { %7551 = vmatmul.mubr.f32.vlgmr.msra.gmra.mxu1 %v7968_v25  ;;  %7563 = vmatprep.subr.mxu0 %v7885_v0  ;;  %v6360_v25 = vand.u32 4294901760, %v6359_v24 }
  0x48   :  { %7556 = vmatmul.mubr.f32.vlgmr.msra.gmra.mxu0 %v2323_v38  ;;  %7559 = vmatpush3.xpose.msra.mxu1 %v2323_v38 }
  0x49   :  { %7564 = vmatpush3.xpose.msra.mxu0 %v2320_v33  ;;  %7560 = vmatprep.mubr.msk.f32.mxu1 %vm7886_vm0, %v7885_v0  ;;  %v6361_v27 = vsub.f32 %v6359_v24, %v6360_v25 }
  0x4a   :  { %7565 = vmatprep.mubr.msk.f32.mxu0 %vm7886_vm0, %v7885_v0  ;;  %7568 = vmatprep.subr.mxu1 %v7885_v0 }
  0x4b   :  { %7561 = vmatmul.mubr.f32.vlgmr.msra.gmra.mxu1 %v7998_v31  ;;  %7573 = vmatprep.subr.mxu0 %v7885_v0  ;;  %v6362_v29 = vand.u32 4294901760, %v6361_v27 }
  0x4c   :  { %7566 = vmatmul.mubr.f32.vlgmr.msra.gmra.mxu0 %v2320_v33  ;;  %7569 = vmatpush3.xpose.msra.mxu1 %v7998_v31 }
  0x4d   :  { %7574 = vmatpush3.xpose.msra.mxu0 %v2321_v34  ;;  %7570 = vmatprep.mubr.msk.f32.mxu1 %vm7886_vm0, %v7885_v0 }
  0x4e   :  { %7575 = vmatprep.mubr.msk.f32.mxu0 %vm7886_vm0, %v7885_v0  ;;  %7578 = vmatprep.subr.mxu1 %v7885_v0 }
  0x4f   :  { %7571 = vmatmul.mubr.f32.vlgmr.msra.gmra.mxu1 %v2321_v34  ;;  %7583 = vmatprep.subr.mxu0 %v7885_v0 }
  0x50   :  { %7576 = vmatmul.mubr.f32.vlgmr.msra.gmra.mxu0 %v7998_v31  ;;  %7579 = vmatpush3.xpose.msra.mxu1 %v7998_v31 }
  0x51   :  { %7584 = vmatpush3.xpose.msra.mxu0 %v8028_v37  ;;  %7580 = vmatprep.mubr.msk.f32.mxu1 %vm7886_vm0, %v7885_v0 }
  0x52   :  { %7585 = vmatprep.mubr.msk.f32.mxu0 %vm7886_vm0, %v7885_v0  ;;  %7588 = vmatprep.subr.mxu1 %v7885_v0 }
  0x53   :  { %7581 = vmatmul.mubr.f32.vlgmr.msra.gmra.mxu1 %v7998_v31  ;;  %7593 = vmatprep.subr.mxu0 %v7885_v0  ;;  %v6806_v31 = vand.u32 4294901760, %v6805_v30 }
  0x54   :  { %7586 = vmatmul.mubr.f32.vlgmr.msra.gmra.mxu0 %v2774_v44  ;;  %7589 = vmatpush3.xpose.msra.mxu1 %v2774_v44 }
  0x55   :  { %7594 = vmatpush3.xpose.msra.mxu0 %v2771_v39  ;;  %7590 = vmatprep.mubr.msk.f32.mxu1 %vm7886_vm0, %v7885_v0  ;;  %v6807_v32 = vsub.f32 %v6805_v30, %v6806_v31 }
  0x56   :  { %7595 = vmatprep.mubr.msk.f32.mxu0 %vm7886_vm0, %v7885_v0  ;;  %7598 = vmatprep.subr.mxu1 %v7885_v0 }
  0x57   :  { %7591 = vmatmul.mubr.f32.vlgmr.msra.gmra.mxu1 %v8028_v37  ;;  %7603 = vmatprep.subr.mxu0 %v7885_v0  ;;  %v6808_v33 = vand.u32 4294901760, %v6807_v32 }
  0x58   :  { %7596 = vmatmul.mubr.f32.vlgmr.msra.gmra.mxu0 %v2771_v39  ;;  %7599 = vmatpush3.xpose.msra.mxu1 %v8028_v37 }
  0x59   :  { %7604 = vmatpush3.xpose.msra.mxu0 %v2772_v40  ;;  %7600 = vmatprep.mubr.msk.f32.mxu1 %vm7886_vm0, %v7885_v0 }
  0x5a   :  { %7605 = vmatprep.mubr.msk.f32.mxu0 %vm7886_vm0, %v7885_v0  ;;  %7608 = vmatprep.subr.mxu1 %v7885_v0 }
  0x5b   :  { %7601 = vmatmul.mubr.f32.vlgmr.msra.gmra.mxu1 %v2772_v40  ;;  %7613 = vmatprep.subr.mxu0 %v7885_v0 }
  0x5c   :  { %7606 = vmatmul.mubr.f32.vlgmr.msra.gmra.mxu0 %v8028_v37  ;;  %7609 = vmatpush3.xpose.msra.mxu1 %v8028_v37 }
  0x5d   :  { %7614 = vmatpush3.xpose.msra.mxu0 %v8058_v43  ;;  %7610 = vmatprep.mubr.msk.f32.mxu1 %vm7886_vm0, %v7885_v0 }
  0x5e   :  { %7615 = vmatprep.mubr.msk.f32.mxu0 %vm7886_vm0, %v7885_v0  ;;  %7618 = vmatprep.subr.mxu1 %v7885_v0 }
  0x5f   :  { %7611 = vmatmul.mubr.f32.vlgmr.msra.gmra.mxu1 %v8028_v37  ;;  %7623 = vmatprep.subr.mxu0 %v7885_v0 }
  0x60   :  { %7616 = vmatmul.mubr.f32.vlgmr.msra.gmra.mxu0 %v3220_v50  ;;  %7619 = vmatpush3.xpose.msra.mxu1 %v3220_v50 }
  0x61   :  { %7624 = vmatpush3.xpose.msra.mxu0 %v3217_v45  ;;  %7620 = vmatprep.mubr.msk.f32.mxu1 %vm7886_vm0, %v7885_v0 }
  0x62   :  { %7625 = vmatprep.mubr.msk.f32.mxu0 %vm7886_vm0, %v7885_v0  ;;  %7628 = vmatprep.subr.mxu1 %v7885_v0 }
  0x63   :  { %7621 = vmatmul.mubr.f32.vlgmr.msra.gmra.mxu1 %v8058_v43  ;;  %7633 = vmatprep.subr.mxu0 %v7885_v0 }
  0x64   :  { %7626 = vmatmul.mubr.f32.vlgmr.msra.gmra.mxu0 %v3217_v45  ;;  %7629 = vmatpush3.xpose.msra.mxu1 %v8058_v43 }
  0x65   :  { %7634 = vmatpush3.xpose.msra.mxu0 %v3218_v46  ;;  %7630 = vmatprep.mubr.msk.f32.mxu1 %vm7886_vm0, %v7885_v0 }
  0x66   :  { %7635 = vmatprep.mubr.msk.f32.mxu0 %vm7886_vm0, %v7885_v0  ;;  %7638 = vmatprep.subr.mxu1 %v7885_v0 }
  0x67   :  { %7631 = vmatmul.mubr.f32.vlgmr.msra.gmra.mxu1 %v3218_v46  ;;  %7643 = vmatprep.subr.mxu0 %v7885_v0 }
  0x68   :  { %7636 = vmatmul.mubr.f32.vlgmr.msra.gmra.mxu0 %v8058_v43  ;;  %7639 = vmatpush3.xpose.msra.mxu1 %v8058_v43 }
  0x69   :  { %7644 = vmatpush3.xpose.msra.mxu0 %v8088_v49  ;;  %7640 = vmatprep.mubr.msk.f32.mxu1 %vm7886_vm0, %v7885_v0 }
  0x6a   :  { %7645 = vmatprep.mubr.msk.f32.mxu0 %vm7886_vm0, %v7885_v0  ;;  %7648 = vmatprep.subr.mxu1 %v7885_v0 }
  0x6b   :  { %7641 = vmatmul.mubr.f32.vlgmr.msra.gmra.mxu1 %v8058_v43  ;;  %7653 = vmatprep.subr.mxu0 %v7885_v0 }
  0x6c   :  { %7646 = vmatmul.mubr.f32.vlgmr.msra.gmra.mxu0 %v3671_v56  ;;  %7649 = vmatpush3.xpose.msra.mxu1 %v3671_v56 }
  0x6d   :  { %7654 = vmatpush3.xpose.msra.mxu0 %v3668_v51  ;;  %7650 = vmatprep.mubr.msk.f32.mxu1 %vm7886_vm0, %v7885_v0 }
  0x6e   :  { %7655 = vmatprep.mubr.msk.f32.mxu0 %vm7886_vm0, %v7885_v0  ;;  %7658 = vmatprep.subr.mxu1 %v7885_v0 }
  0x6f   :  { %7651 = vmatmul.mubr.f32.vlgmr.msra.gmra.mxu1 %v8088_v49  ;;  %7663 = vmatprep.subr.mxu0 %v7885_v0 }
  0x70   :  { %7656 = vmatmul.mubr.f32.vlgmr.msra.gmra.mxu0 %v3668_v51  ;;  %7659 = vmatpush3.xpose.msra.mxu1 %v8088_v49 }
  0x71   :  { %7664 = vmatpush3.xpose.msra.mxu0 %v3669_v52  ;;  %7660 = vmatprep.mubr.msk.f32.mxu1 %vm7886_vm0, %v7885_v0 }
  0x72   :  { %7665 = vmatprep.mubr.msk.f32.mxu0 %vm7886_vm0, %v7885_v0  ;;  %7668 = vmatprep.subr.mxu1 %v7885_v0 }
  0x73   :  { %7661 = vmatmul.mubr.f32.vlgmr.msra.gmra.mxu1 %v3669_v52  ;;  %7673 = vmatprep.subr.mxu0 %v7885_v0 }
  0x74   :  { %7666 = vmatmul.mubr.f32.vlgmr.msra.gmra.mxu0 %v8088_v49  ;;  %7669 = vmatpush3.xpose.msra.mxu1 %v8088_v49 }
  0x75   :  { %7674 = vmatpush3.xpose.msra.mxu0 %v8118_v55  ;;  %7670 = vmatprep.mubr.msk.f32.mxu1 %vm7886_vm0, %v7885_v0 }
  0x76   :  { %7675 = vmatprep.mubr.msk.f32.mxu0 %vm7886_vm0, %v7885_v0  ;;  %7678 = vmatprep.subr.mxu1 %v7885_v0 }
  0x77   :  { %7671 = vmatmul.mubr.f32.vlgmr.msra.gmra.mxu1 %v8088_v49  ;;  %7683 = vmatprep.subr.mxu0 %v7885_v0 }
  0x78   :  { %7676 = vmatmul.mubr.f32.vlgmr.msra.gmra.mxu0 %v4117_v62  ;;  %7679 = vmatpush3.xpose.msra.mxu1 %v4117_v62 }
  0x79   :  { %7684 = vmatpush3.xpose.msra.mxu0 %v4114_v57  ;;  %7680 = vmatprep.mubr.msk.f32.mxu1 %vm7886_vm0, %v7885_v0 }
  0x7a   :  { %7685 = vmatprep.mubr.msk.f32.mxu0 %vm7886_vm0, %v7885_v0  ;;  %7688 = vmatprep.subr.mxu1 %v7885_v0 }
  0x7b   :  { %7681 = vmatmul.mubr.f32.vlgmr.msra.gmra.mxu1 %v8118_v55  ;;  %7693 = vmatprep.subr.mxu0 %v7885_v0 }
  0x7c   :  { %7686 = vmatmul.mubr.f32.vlgmr.msra.gmra.mxu0 %v4114_v57  ;;  %7689 = vmatpush3.xpose.msra.mxu1 %v8118_v55 }
  0x7d   :  { %7694 = vmatpush3.xpose.msra.mxu0 %v4115_v58  ;;  %7690 = vmatprep.mubr.msk.f32.mxu1 %vm7886_vm0, %v7885_v0 }
  0x7e   :  { %7695 = vmatprep.mubr.msk.f32.mxu0 %vm7886_vm0, %v7885_v0  ;;  %7698 = vmatprep.subr.mxu1 %v7885_v0 }
  0x7f   :  { %7691 = vmatmul.mubr.f32.vlgmr.msra.gmra.mxu1 %v4115_v58  ;;  %7703 = vmatprep.subr.mxu0 %v7885_v0 }
  0x80   :  { %7696 = vmatmul.mubr.f32.vlgmr.msra.gmra.mxu0 %v8118_v55  ;;  %7699 = vmatpush3.xpose.msra.mxu1 %v8118_v55 }
  0x81   :  { %7704 = vmatpush3.xpose.msra.mxu0 %v8148_v61  ;;  %7700 = vmatprep.mubr.msk.f32.mxu1 %vm7886_vm0, %v7885_v0 }
  0x82   :  { %7705 = vmatprep.mubr.msk.f32.mxu0 %vm7886_vm0, %v7885_v0  ;;  %7708 = vmatprep.subr.mxu1 %v7885_v0 }
  0x83   :  { %7701 = vmatmul.mubr.f32.vlgmr.msra.gmra.mxu1 %v8118_v55  ;;  %7713 = vmatprep.subr.mxu0 %v7885_v0 }
  0x84   :  { %7706 = vmatmul.mubr.f32.vlgmr.msra.gmra.mxu0 %v4568_v5  ;;  %7709 = vmatpush3.xpose.msra.mxu1 %v4568_v5 }
  0x85   :  { %7714 = vmatpush3.xpose.msra.mxu0 %v4565_v63  ;;  %7710 = vmatprep.mubr.msk.f32.mxu1 %vm7886_vm0, %v7885_v0 }
  0x86   :  { %7715 = vmatprep.mubr.msk.f32.mxu0 %vm7886_vm0, %v7885_v0  ;;  %7718 = vmatprep.subr.mxu1 %v7885_v0 }
  0x87   :  { %7711 = vmatmul.mubr.f32.vlgmr.msra.gmra.mxu1 %v8148_v61  ;;  %7723 = vmatprep.subr.mxu0 %v7885_v0 }
  0x88   :  { %7716 = vmatmul.mubr.f32.vlgmr.msra.gmra.mxu0 %v4565_v63  ;;  %7719 = vmatpush3.xpose.msra.mxu1 %v8148_v61 }
  0x89   :  { %7724 = vmatpush3.xpose.msra.mxu0 %v4566_v1  ;;  %7720 = vmatprep.mubr.msk.f32.mxu1 %vm7886_vm0, %v7885_v0 }
  0x8a   :  { %7725 = vmatprep.mubr.msk.f32.mxu0 %vm7886_vm0, %v7885_v0  ;;  %7728 = vmatprep.subr.mxu1 %v7885_v0 }
  0x8b   :  { %7721 = vmatmul.mubr.f32.vlgmr.msra.gmra.mxu1 %v4566_v1  ;;  %7733 = vmatprep.subr.mxu0 %v7885_v0 }
  0x8c   :  { %7726 = vmatmul.mubr.f32.vlgmr.msra.gmra.mxu0 %v8148_v61  ;;  %7729 = vmatpush3.xpose.msra.mxu1 %v8148_v61 }
  0x8d   :  { %7734 = vmatpush3.xpose.msra.mxu0 %v8178_v4  ;;  %7730 = vmatprep.mubr.msk.f32.mxu1 %vm7886_vm0, %v7885_v0 }
  0x8e   :  { %7735 = vmatprep.mubr.msk.f32.mxu0 %vm7886_vm0, %v7885_v0  ;;  %7738 = vmatprep.subr.mxu1 %v7885_v0 }
  0x8f   :  { %7731 = vmatmul.mubr.f32.vlgmr.msra.gmra.mxu1 %v8148_v61  ;;  %7743 = vmatprep.subr.mxu0 %v7885_v0 }
  0x90   :  { %7736 = vmatmul.mubr.f32.vlgmr.msra.gmra.mxu0 %v5014_v11  ;;  %7739 = vmatpush3.xpose.msra.mxu1 %v5014_v11 }
  0x91   :  { %7744 = vmatpush3.xpose.msra.mxu0 %v5011_v6  ;;  %7740 = vmatprep.mubr.msk.f32.mxu1 %vm7886_vm0, %v7885_v0 }
  0x92   :  { %7745 = vmatprep.mubr.msk.f32.mxu0 %vm7886_vm0, %v7885_v0  ;;  %7748 = vmatprep.subr.mxu1 %v7885_v0 }
  0x93   :  { %7741 = vmatmul.mubr.f32.vlgmr.msra.gmra.mxu1 %v8178_v4  ;;  %7753 = vmatprep.subr.mxu0 %v7885_v0 }
  0x94   :  { %7746 = vmatmul.mubr.f32.vlgmr.msra.gmra.mxu0 %v5011_v6  ;;  %7749 = vmatpush3.xpose.msra.mxu1 %v8178_v4 }
  0x95   :  { %7754 = vmatpush3.xpose.msra.mxu0 %v5012_v7  ;;  %7750 = vmatprep.mubr.msk.f32.mxu1 %vm7886_vm0, %v7885_v0 }
  0x96   :  { %7755 = vmatprep.mubr.msk.f32.mxu0 %vm7886_vm0, %v7885_v0  ;;  %7758 = vmatprep.subr.mxu1 %v7885_v0 }
  0x97   :  { %7751 = vmatmul.mubr.f32.vlgmr.msra.gmra.mxu1 %v5012_v7  ;;  %7763 = vmatprep.subr.mxu0 %v7885_v0 }
  0x98   :  { %7756 = vmatmul.mubr.f32.vlgmr.msra.gmra.mxu0 %v8178_v4  ;;  %7759 = vmatpush3.xpose.msra.mxu1 %v8178_v4 }
  0x99   :  { %7764 = vmatpush3.xpose.msra.mxu0 %v8208_v10  ;;  %7760 = vmatprep.mubr.msk.f32.mxu1 %vm7886_vm0, %v7885_v0 }
  0x9a   :  { %7765 = vmatprep.mubr.msk.f32.mxu0 %vm7886_vm0, %v7885_v0  ;;  %7768 = vmatprep.subr.mxu1 %v7885_v0 }
  0x9b   :  { %7761 = vmatmul.mubr.f32.vlgmr.msra.gmra.mxu1 %v8178_v4  ;;  %7773 = vmatprep.subr.mxu0 %v7885_v0 }
  0x9c   :  { %7766 = vmatmul.mubr.f32.vlgmr.msra.gmra.mxu0 %v5465_v17  ;;  %7769 = vmatpush3.xpose.msra.mxu1 %v5465_v17 }
  0x9d   :  { %7774 = vmatpush3.xpose.msra.mxu0 %v5462_v12  ;;  %7770 = vmatprep.mubr.msk.f32.mxu1 %vm7886_vm0, %v7885_v0 }
  0x9e   :  { %7775 = vmatprep.mubr.msk.f32.mxu0 %vm7886_vm0, %v7885_v0  ;;  %7778 = vmatprep.subr.mxu1 %v7885_v0 }
  0x9f   :  { %7771 = vmatmul.mubr.f32.vlgmr.msra.gmra.mxu1 %v8208_v10  ;;  %7783 = vmatprep.subr.mxu0 %v7885_v0 }
  0xa0   :  { %7776 = vmatmul.mubr.f32.vlgmr.msra.gmra.mxu0 %v5462_v12  ;;  %7779 = vmatpush3.xpose.msra.mxu1 %v8208_v10 }
  0xa1   :  { %7784 = vmatpush3.xpose.msra.mxu0 %v5463_v13  ;;  %7780 = vmatprep.mubr.msk.f32.mxu1 %vm7886_vm0, %v7885_v0 }
  0xa2   :  { %7785 = vmatprep.mubr.msk.f32.mxu0 %vm7886_vm0, %v7885_v0  ;;  %7788 = vmatprep.subr.mxu1 %v7885_v0 }
  0xa3   :  { %7781 = vmatmul.mubr.f32.vlgmr.msra.gmra.mxu1 %v5463_v13  ;;  %7793 = vmatprep.subr.mxu0 %v7885_v0 }
  0xa4   :  { %7786 = vmatmul.mubr.f32.vlgmr.msra.gmra.mxu0 %v8208_v10  ;;  %7789 = vmatpush3.xpose.msra.mxu1 %v8208_v10 }
  0xa5   :  { %7794 = vmatpush3.xpose.msra.mxu0 %v8238_v16  ;;  %7790 = vmatprep.mubr.msk.f32.mxu1 %vm7886_vm0, %v7885_v0 }
  0xa6   :  { %7795 = vmatprep.mubr.msk.f32.mxu0 %vm7886_vm0, %v7885_v0  ;;  %7798 = vmatprep.subr.mxu1 %v7885_v0 }
  0xa7   :  { %7791 = vmatmul.mubr.f32.vlgmr.msra.gmra.mxu1 %v8208_v10  ;;  %7803 = vmatprep.subr.mxu0 %v7885_v0 }
  0xa8   :  { %7796 = vmatmul.mubr.f32.vlgmr.msra.gmra.mxu0 %v5911_v23  ;;  %7799 = vmatpush3.xpose.msra.mxu1 %v5911_v23 }
  0xa9   :  { %7804 = vmatpush3.xpose.msra.mxu0 %v5908_v18  ;;  %7800 = vmatprep.mubr.msk.f32.mxu1 %vm7886_vm0, %v7885_v0 }
  0xaa   :  { %7805 = vmatprep.mubr.msk.f32.mxu0 %vm7886_vm0, %v7885_v0  ;;  %7808 = vmatprep.subr.mxu1 %v7885_v0 }
  0xab   :  { %7801 = vmatmul.mubr.f32.vlgmr.msra.gmra.mxu1 %v8238_v16  ;;  %7813 = vmatprep.subr.mxu0 %v7885_v0 }
  0xac   :  { %7806 = vmatmul.mubr.f32.vlgmr.msra.gmra.mxu0 %v5908_v18  ;;  %7809 = vmatpush3.xpose.msra.mxu1 %v8238_v16 }
  0xad   :  { %7814 = vmatpush3.xpose.msra.mxu0 %v5909_v19  ;;  %7810 = vmatprep.mubr.msk.f32.mxu1 %vm7886_vm0, %v7885_v0 }
  0xae   :  { %7815 = vmatprep.mubr.msk.f32.mxu0 %vm7886_vm0, %v7885_v0  ;;  %7818 = vmatprep.subr.mxu1 %v7885_v0 }
  0xaf   :  { %7811 = vmatmul.mubr.f32.vlgmr.msra.gmra.mxu1 %v5909_v19  ;;  %7823 = vmatprep.subr.mxu0 %v7885_v0 }
  0xb0   :  { %7816 = vmatmul.mubr.f32.vlgmr.msra.gmra.mxu0 %v8238_v16  ;;  %7819 = vmatpush3.xpose.msra.mxu1 %v8238_v16 }
  0xb1   :  { %7824 = vmatpush3.xpose.msra.mxu0 %v8268_v22  ;;  %7820 = vmatprep.mubr.msk.f32.mxu1 %vm7886_vm0, %v7885_v0 }
  0xb2   :  { %7825 = vmatprep.mubr.msk.f32.mxu0 %vm7886_vm0, %v7885_v0  ;;  %7828 = vmatprep.subr.mxu1 %v7885_v0 }
  0xb3   :  { %7821 = vmatmul.mubr.f32.vlgmr.msra.gmra.mxu1 %v8238_v16  ;;  %7833 = vmatprep.subr.mxu0 %v7885_v0 }
  0xb4   :  { %7826 = vmatmul.mubr.f32.vlgmr.msra.gmra.mxu0 %v6362_v29  ;;  %7829 = vmatpush3.xpose.msra.mxu1 %v6362_v29 }
  0xb5   :  { %7834 = vmatpush3.xpose.msra.mxu0 %v6359_v24  ;;  %7830 = vmatprep.mubr.msk.f32.mxu1 %vm7886_vm0, %v7885_v0 }
  0xb6   :  { %7835 = vmatprep.mubr.msk.f32.mxu0 %vm7886_vm0, %v7885_v0  ;;  %7838 = vmatprep.subr.mxu1 %v7885_v0 }
  0xb7   :  { %7831 = vmatmul.mubr.f32.vlgmr.msra.gmra.mxu1 %v8268_v22  ;;  %7843 = vmatprep.subr.mxu0 %v7885_v0 }
  0xb8   :  { %7836 = vmatmul.mubr.f32.vlgmr.msra.gmra.mxu0 %v6359_v24  ;;  %7839 = vmatpush3.xpose.msra.mxu1 %v8268_v22 }
  0xb9   :  { %7844 = vmatpush3.xpose.msra.mxu0 %v6360_v25  ;;  %7840 = vmatprep.mubr.msk.f32.mxu1 %vm7886_vm0, %v7885_v0 }
  0xba   :  { %7845 = vmatprep.mubr.msk.f32.mxu0 %vm7886_vm0, %v7885_v0  ;;  %7848 = vmatprep.subr.mxu1 %v7885_v0 }
  0xbb   :  { %7841 = vmatmul.mubr.f32.vlgmr.msra.gmra.mxu1 %v6360_v25  ;;  %7853 = vmatprep.subr.mxu0 %v7885_v0 }
  0xbc   :  { %7846 = vmatmul.mubr.f32.vlgmr.msra.gmra.mxu0 %v8268_v22  ;;  %7849 = vmatpush3.xpose.msra.mxu1 %v8268_v22 }
  0xbd   :  { %7854 = vmatpush3.xpose.msra.mxu0 %v6769_v28  ;;  %7850 = vmatprep.mubr.msk.f32.mxu1 %vm7886_vm0, %v7885_v0 }
  0xbe   :  { %7855 = vmatprep.mubr.msk.f32.mxu0 %vm7886_vm0, %v7885_v0  ;;  %7858 = vmatprep.subr.mxu1 %v7885_v0 }
  0xbf   :  { %7851 = vmatmul.mubr.f32.vlgmr.msra.gmra.mxu1 %v8268_v22  ;;  %7863 = vmatprep.subr.mxu0 %v7885_v0 }
  0xc0   :  { %7856 = vmatmul.mubr.f32.vlgmr.msra.gmra.mxu0 %v6808_v33  ;;  %7859 = vmatpush3.xpose.msra.mxu1 %v6808_v33 }
  0xc1   :  { %7864 = vmatpush3.xpose.msra.mxu0 %v6805_v30  ;;  %7860 = vmatprep.mubr.msk.f32.mxu1 %vm7886_vm0, %v7885_v0 }
  0xc2   :  { %7865 = vmatprep.mubr.msk.f32.mxu0 %vm7886_vm0, %v7885_v0  ;;  %7868 = vmatprep.subr.mxu1 %v7885_v0 }
  0xc3   :  { %7861 = vmatmul.mubr.f32.vlgmr.msra.gmra.mxu1 %v6769_v28  ;;  %7873 = vmatprep.subr.mxu0 %v7885_v0 }
  0xc4   :  { %7866 = vmatmul.mubr.f32.vlgmr.msra.gmra.mxu0 %v6805_v30  ;;  %7869 = vmatpush3.xpose.msra.mxu1 %v6769_v28 }
  0xc5   :  { %7874 = vmatpush3.xpose.msra.mxu0 %v6806_v31  ;;  %7870 = vmatprep.mubr.msk.f32.mxu1 %vm7886_vm0, %v7885_v0 }
  0xc6   :  { %7875 = vmatprep.mubr.msk.f32.mxu0 %vm7886_vm0, %v7885_v0  ;;  %7878 = vmatprep.subr.mxu1 %v7885_v0 }
  0xc7   :  { %7871 = vmatmul.mubr.f32.vlgmr.msra.gmra.mxu1 %v6806_v31 }
  0xc8   :  { %7876 = vmatmul.mubr.f32.vlgmr.msra.gmra.mxu0 %v6769_v28  ;;  %7879 = vmatpush3.xpose.msra.mxu1 %v6769_v28 }
  0xc9   :  { %7880 = vmatprep.mubr.msk.f32.mxu1 %vm7886_vm0, %v7885_v0 }
  0xcb   :  { %7881 = vmatmul.mubr.f32.vlgmr.msra.gmra.mxu1 %v6769_v28 }
  0xcc   :  { %v92_v34 = vpop.f32.mrf.mxu0 }
  0xce   :  { %v7407_v35 = vpop.f32.mrf.mxu0 }
  0xcf   :  { %v168_v36 = vpop.f32.mrf.mxu1 }
  0xd0   :  { %v169_v37 = vadd.f32 %v168_v36, %v92_v34  ;;  %v242_v38 = vpop.f32.mrf.mxu0 }
  0xd1   :  { %v7412_v39 = vpop.f32.mrf.mxu1 }
  0xd2   :  { %v243_v40 = vadd.f32 %v242_v38, %v169_v37  ;;  %v7417_v41 = vpop.f32.mrf.mxu0 }
  0xd3   :  { %v316_v42 = vpop.f32.mrf.mxu1 }
  0xd4   :  { %v317_v43 = vadd.f32 %v316_v42, %v243_v40  ;;  %v390_v44 = vpop.f32.mrf.mxu0 }
  0xd5   :  { %v7422_v45 = vpop.f32.mrf.mxu1 }
  0xd6   :  { %v391_v46 = vadd.f32 %v390_v44, %v317_v43  ;;  %v7427_v47 = vpop.f32.mrf.mxu0 }
  0xd7   :  { %v462_v48 = vpop.f32.mrf.mxu1 }
  0xd8   :  { %v463_v49 = vadd.f32 %v462_v48, %v391_v46  ;;  %v538_v50 = vpop.f32.mrf.mxu0 }
  0xd9   :  { %v7432_v51 = vpop.f32.mrf.mxu1 }
  0xda   :  { %v7437_v52 = vpop.f32.mrf.mxu0 }
  0xdb   :  { %v614_v53 = vpop.f32.mrf.mxu1 }
  0xdc   :  { %v615_v54 = vadd.f32 %v614_v53, %v538_v50  ;;  %v688_v55 = vpop.f32.mrf.mxu0 }
  0xdd   :  { %v7442_v56 = vpop.f32.mrf.mxu1 }
  0xde   :  { %v689_v57 = vadd.f32 %v688_v55, %v615_v54  ;;  %v7447_v58 = vpop.f32.mrf.mxu0 }
  0xdf   :  { %v762_v59 = vpop.f32.mrf.mxu1 }
  0xe0   :  { %v763_v60 = vadd.f32 %v762_v59, %v689_v57  ;;  %v836_v61 = vpop.f32.mrf.mxu0 }
  0xe1   :  { %v7452_v62 = vpop.f32.mrf.mxu1 }
  0xe2   :  { %v837_v63 = vadd.f32 %v836_v61, %v763_v60  ;;  %v7457_v1 = vpop.f32.mrf.mxu0 }
  0xe3   :  { %v908_v2 = vpop.f32.mrf.mxu1 }
  0xe4   :  { %v909_v3 = vadd.f32 %v908_v2, %v837_v63  ;;  %v984_v4 = vpop.f32.mrf.mxu0 }
  0xe5   :  { %v985_v5 = vadd.f32 %v984_v4, %v463_v49  ;;  %v7462_v6 = vpop.f32.mrf.mxu1 }
  0xe6   :  { %v7467_v7 = vpop.f32.mrf.mxu0 }
  0xe7   :  { %v1060_v8 = vpop.f32.mrf.mxu1 }
  0xe8   :  { %v1061_v9 = vadd.f32 %v1060_v8, %v985_v5  ;;  %v1134_v10 = vpop.f32.mrf.mxu0 }
  0xe9   :  { %v7472_v11 = vpop.f32.mrf.mxu1 }
  0xea   :  { %v1135_v12 = vadd.f32 %v1134_v10, %v1061_v9  ;;  %v7477_v13 = vpop.f32.mrf.mxu0 }
  0xeb   :  { %v1208_v14 = vpop.f32.mrf.mxu1 }
  0xec   :  { %v1209_v15 = vadd.f32 %v1208_v14, %v1135_v12  ;;  %v1282_v16 = vpop.f32.mrf.mxu0 }
  0xed   :  { %v7482_v17 = vpop.f32.mrf.mxu1 }
  0xee   :  { %v1283_v18 = vadd.f32 %v1282_v16, %v1209_v15  ;;  %v7487_v19 = vpop.f32.mrf.mxu0 }
  0xef   :  { %v1354_v20 = vpop.f32.mrf.mxu1 }
  0xf0   :  { %v1355_v21 = vadd.f32 %v1354_v20, %v1283_v18  ;;  %v1430_v22 = vpop.f32.mrf.mxu0 }
  0xf1   :  { %v1431_v23 = vadd.f32 %v1430_v22, %v909_v3  ;;  %v7492_v24 = vpop.f32.mrf.mxu1 }
  0xf2   :  { %v7497_v25 = vpop.f32.mrf.mxu0 }
  0xf3   :  { %v1506_v26 = vpop.f32.mrf.mxu1 }
  0xf4   :  { %v1507_v27 = vadd.f32 %v1506_v26, %v1431_v23  ;;  %v1580_v28 = vpop.f32.mrf.mxu0 }
  0xf5   :  { %v7502_v29 = vpop.f32.mrf.mxu1 }
  0xf6   :  { %v1581_v30 = vadd.f32 %v1580_v28, %v1507_v27  ;;  %v7507_v31 = vpop.f32.mrf.mxu0 }
  0xf7   :  { %v1654_v32 = vpop.f32.mrf.mxu1 }
  0xf8   :  { %v1655_v33 = vadd.f32 %v1654_v32, %v1581_v30  ;;  %v1728_v34 = vpop.f32.mrf.mxu0 }
  0xf9   :  { %v7512_v35 = vpop.f32.mrf.mxu1 }
  0xfa   :  { %v1729_v36 = vadd.f32 %v1728_v34, %v1655_v33  ;;  %v7517_v37 = vpop.f32.mrf.mxu0 }
  0xfb   :  { %v1800_v38 = vpop.f32.mrf.mxu1 }
  0xfc   :  { %v1801_v39 = vadd.f32 %v1800_v38, %v1729_v36  ;;  %v1879_v40 = vpop.f32.mrf.mxu0 }
  0xfd   :  { %v7522_v41 = vpop.f32.mrf.mxu1 }
  0xfe   :  { %v7527_v42 = vpop.f32.mrf.mxu0 }
  0xff   :  { %v1955_v43 = vpop.f32.mrf.mxu1 }
 0x100   :  { %v1956_v44 = vadd.f32 %v1955_v43, %v1879_v40  ;;  %v2029_v45 = vpop.f32.mrf.mxu0 }
 0x101   :  { %v7532_v46 = vpop.f32.mrf.mxu1 }
 0x102   :  { %v2030_v47 = vadd.f32 %v2029_v45, %v1956_v44  ;;  %v7537_v48 = vpop.f32.mrf.mxu0 }
 0x103   :  { %v2103_v49 = vpop.f32.mrf.mxu1 }
 0x104   :  { %v2104_v50 = vadd.f32 %v2103_v49, %v2030_v47  ;;  %v2177_v51 = vpop.f32.mrf.mxu0 }
 0x105   :  { %v7542_v52 = vpop.f32.mrf.mxu1 }
 0x106   :  { %v2178_v53 = vadd.f32 %v2177_v51, %v2104_v50  ;;  %v7547_v54 = vpop.f32.mrf.mxu0 }
 0x107   :  { %v2249_v55 = vpop.f32.mrf.mxu1 }
 0x108   :  { %v2250_v56 = vadd.f32 %v2249_v55, %v2178_v53  ;;  %v2325_v57 = vpop.f32.mrf.mxu0 }
 0x109   :  { %v7552_v58 = vpop.f32.mrf.mxu1 }
 0x10a   :  { %v2699_v59 = vadd.f32 %v2250_v56, %v1355_v21  ;;  %v7557_v0 = vpop.f32.mrf.mxu0 }
 0x10b   :  { %v2401_v60 = vpop.f32.mrf.mxu1 }
 0x10c   :  { %v2402_v61 = vadd.f32 %v2401_v60, %v2325_v57  ;;  %v2475_v62 = vpop.f32.mrf.mxu0 }
 0x10d   :  { %v7562_v63 = vpop.f32.mrf.mxu1 }
 0x10e   :  { %v2476_v1 = vadd.f32 %v2475_v62, %v2402_v61  ;;  %v7567_v2 = vpop.f32.mrf.mxu0 }
 0x10f   :  { %v2549_v3 = vpop.f32.mrf.mxu1 }
 0x110   :  { %v2550_v4 = vadd.f32 %v2549_v3, %v2476_v1  ;;  %v2623_v5 = vpop.f32.mrf.mxu0 }
 0x111   :  { %v7572_v6 = vpop.f32.mrf.mxu1 }
 0x112   :  { %v2624_v7 = vadd.f32 %v2623_v5, %v2550_v4  ;;  %v7577_v8 = vpop.f32.mrf.mxu0 }
 0x113   :  { %v2695_v9 = vpop.f32.mrf.mxu1 }
 0x114   :  { %v2696_v10 = vadd.f32 %v2695_v9, %v2624_v7  ;;  %v2776_v11 = vpop.f32.mrf.mxu0 }
 0x115   :  { %v7582_v12 = vpop.f32.mrf.mxu1 }
 0x116   :  { %v2700_v13 = vadd.f32 %v2696_v10, %v1801_v39  ;;  %v7587_v14 = vpop.f32.mrf.mxu0 }
 0x117   :  { %v2852_v15 = vpop.f32.mrf.mxu1 }
 0x118   :  { %v2853_v16 = vadd.f32 %v2852_v15, %v2776_v11  ;;  %v2926_v17 = vpop.f32.mrf.mxu0 }
 0x119   :  { %v7592_v18 = vpop.f32.mrf.mxu1 }
 0x11a   :  { %v2927_v19 = vadd.f32 %v2926_v17, %v2853_v16  ;;  %v7597_v20 = vpop.f32.mrf.mxu0 }
 0x11b   :  { %v3000_v21 = vpop.f32.mrf.mxu1 }
 0x11c   :  { %v3001_v22 = vadd.f32 %v3000_v21, %v2927_v19  ;;  %v3074_v23 = vpop.f32.mrf.mxu0 }
 0x11d   :  { %v7602_v24 = vpop.f32.mrf.mxu1 }
 0x11e   :  { %v3075_v25 = vadd.f32 %v3074_v23, %v3001_v22  ;;  %v7607_v26 = vpop.f32.mrf.mxu0 }
 0x11f   :  { %v3146_v27 = vpop.f32.mrf.mxu1 }
 0x120   :  { %v3147_v28 = vadd.f32 %v3146_v27, %v3075_v25  ;;  %v3222_v29 = vpop.f32.mrf.mxu0 }
 0x121   :  { %v7612_v30 = vpop.f32.mrf.mxu1 }
 0x122   :  { %v3596_v31 = vadd.f32 %v3147_v28, %v2699_v59  ;;  %v7617_v32 = vpop.f32.mrf.mxu0 }
 0x123   :  { %v3298_v33 = vpop.f32.mrf.mxu1 }
 0x124   :  { %v3299_v34 = vadd.f32 %v3298_v33, %v3222_v29  ;;  %v3372_v35 = vpop.f32.mrf.mxu0 }
 0x125   :  { %v7622_v36 = vpop.f32.mrf.mxu1 }
 0x126   :  { %v3373_v37 = vadd.f32 %v3372_v35, %v3299_v34  ;;  %v7627_v38 = vpop.f32.mrf.mxu0 }
 0x127   :  { %v3446_v39 = vpop.f32.mrf.mxu1 }
 0x128   :  { %v3447_v40 = vadd.f32 %v3446_v39, %v3373_v37  ;;  %v3520_v41 = vpop.f32.mrf.mxu0 }
 0x129   :  { %v7632_v42 = vpop.f32.mrf.mxu1 }
 0x12a   :  { %v3521_v43 = vadd.f32 %v3520_v41, %v3447_v40  ;;  %v7637_v44 = vpop.f32.mrf.mxu0 }
 0x12b   :  { %v3592_v45 = vpop.f32.mrf.mxu1 }
 0x12c   :  { %v3593_v46 = vadd.f32 %v3592_v45, %v3521_v43  ;;  %v3673_v47 = vpop.f32.mrf.mxu0 }
 0x12d   :  { %v7642_v48 = vpop.f32.mrf.mxu1 }
 0x12e   :  { %v3597_v49 = vadd.f32 %v3593_v46, %v2700_v13  ;;  %v7647_v50 = vpop.f32.mrf.mxu0 }
 0x12f   :  { %v3749_v51 = vpop.f32.mrf.mxu1 }
 0x130   :  { %v3750_v52 = vadd.f32 %v3749_v51, %v3673_v47  ;;  %v3823_v53 = vpop.f32.mrf.mxu0 }
 0x131   :  { %v7652_v54 = vpop.f32.mrf.mxu1 }
 0x132   :  { %v3824_v55 = vadd.f32 %v3823_v53, %v3750_v52  ;;  %v7657_v56 = vpop.f32.mrf.mxu0 }
 0x133   :  { %v3897_v57 = vpop.f32.mrf.mxu1 }
 0x134   :  { %v3898_v58 = vadd.f32 %v3897_v57, %v3824_v55  ;;  %v3971_v59 = vpop.f32.mrf.mxu0 }
 0x135   :  { %v7662_v0 = vpop.f32.mrf.mxu1 }
 0x136   :  { %v3972_v60 = vadd.f32 %v3971_v59, %v3898_v58  ;;  %v7667_v61 = vpop.f32.mrf.mxu0 }
 0x137   :  { %v4043_v62 = vpop.f32.mrf.mxu1 }
 0x138   :  { %v4044_v63 = vadd.f32 %v4043_v62, %v3972_v60  ;;  %v4119_v1 = vpop.f32.mrf.mxu0 }
 0x139   :  { %v7672_v2 = vpop.f32.mrf.mxu1 }
 0x13a   :  { %v8360_v3 = vadd.f32 %v4044_v63, %v3596_v31  ;;  %v7677_v4 = vpop.f32.mrf.mxu0 }
 0x13b   :  { %v4195_v5 = vpop.f32.mrf.mxu1 }
 0x13c   :  { %v4196_v6 = vadd.f32 %v4195_v5, %v4119_v1  ;;  %v4269_v7 = vpop.f32.mrf.mxu0 }
 0x13d   :  { %v7682_v8 = vpop.f32.mrf.mxu1 }
 0x13e   :  { %v4270_v9 = vadd.f32 %v4269_v7, %v4196_v6  ;;  %v7687_v10 = vpop.f32.mrf.mxu0 }
 0x13f   :  { %v4343_v11 = vpop.f32.mrf.mxu1 }
 0x140   :  { %v4344_v12 = vadd.f32 %v4343_v11, %v4270_v9  ;;  %v4417_v13 = vpop.f32.mrf.mxu0 }
 0x141   :  { %v7692_v14 = vpop.f32.mrf.mxu1 }
 0x142   :  { %v4418_v15 = vadd.f32 %v4417_v13, %v4344_v12  ;;  %v7697_v16 = vpop.f32.mrf.mxu0 }
 0x143   :  { %v4489_v17 = vpop.f32.mrf.mxu1 }
 0x144   :  { %v4490_v18 = vadd.f32 %v4489_v17, %v4418_v15  ;;  %v4570_v19 = vpop.f32.mrf.mxu0 }
 0x145   :  { %v7702_v20 = vpop.f32.mrf.mxu1 }
 0x146   :  { %v8362_v21 = vadd.f32 %v4490_v18, %v3597_v49  ;;  %v7707_v22 = vpop.f32.mrf.mxu0 }
 0x147   :  { %v4646_v23 = vpop.f32.mrf.mxu1 }
 0x148   :  { %v4720_v24 = vpop.f32.mrf.mxu0  ;;  %v4647_v58 = vadd.f32 %v4646_v23, %v4570_v19 }
 0x149   :  { %v7712_v25 = vpop.f32.mrf.mxu1 }
 0x14a   :  { %v7717_v26 = vpop.f32.mrf.mxu0  ;;  %v4721_v63 = vadd.f32 %v4720_v24, %v4647_v58 }
 0x14b   :  { %v4794_v27 = vpop.f32.mrf.mxu1 }
 0x14c   :  { %v4868_v28 = vpop.f32.mrf.mxu0  ;;  %v4795_v7 = vadd.f32 %v4794_v27, %v4721_v63 }
 0x14d   :  { %v7722_v29 = vpop.f32.mrf.mxu1 }
 0x14e   :  { %v7727_v30 = vpop.f32.mrf.mxu0  ;;  %v4869_v13 = vadd.f32 %v4868_v28, %v4795_v7 }
 0x14f   :  { %v4940_v31 = vpop.f32.mrf.mxu1 }
 0x150   :  { %v5016_v32 = vpop.f32.mrf.mxu0  ;;  %v4941_v23 = vadd.f32 %v4940_v31, %v4869_v13  ;;  %v7186_v31 = vld [vmem:[%s8387_s1] sm:$0xff] }
 0x151   :  { %v7732_v33 = vpop.f32.mrf.mxu1 }
 0x152   :  { %v7737_v34 = vpop.f32.mrf.mxu0  ;;  %v5390_v28 = vadd.f32 %v4941_v23, %v8360_v3 }
 0x153   :  { %v5092_v35 = vpop.f32.mrf.mxu1 }
 0x154   :  { %v5166_v36 = vpop.f32.mrf.mxu0  ;;  %v5093_v14 = vadd.f32 %v5092_v35, %v5016_v32 }
 0x155   :  { %v7742_v37 = vpop.f32.mrf.mxu1 }
 0x156   :  { %v7747_v38 = vpop.f32.mrf.mxu0  ;;  %v5167_v24 = vadd.f32 %v5166_v36, %v5093_v14 }
 0x157   :  { %v5240_v39 = vpop.f32.mrf.mxu1 }
 0x158   :  { %v8364_v40 = vpop.f32.mrf.mxu0  ;;  %v5241_v32 = vadd.f32 %v5240_v39, %v5167_v24 }
 0x159   :  { %v7752_v41 = vpop.f32.mrf.mxu1 }
 0x15a   :  { %v7757_v42 = vpop.f32.mrf.mxu0 }
 0x15b   :  { %v8366_v43 = vpop.f32.mrf.mxu1 }
 0x15c   :  { %v5467_v44 = vpop.f32.mrf.mxu0 }
 0x15d   :  { %v7762_v45 = vpop.f32.mrf.mxu1 }
 0x15e   :  { %v7767_v46 = vpop.f32.mrf.mxu0 }
 0x15f   :  { %v5543_v47 = vpop.f32.mrf.mxu1 }
 0x160   :  { %v5617_v48 = vpop.f32.mrf.mxu0  ;;  %v5544_v60 = vadd.f32 %v5543_v47, %v5467_v44  ;;  %v5315_v47 = vadd.f32 %v8364_v40, %v5241_v32 }
 0x161   :  { %v7772_v49 = vpop.f32.mrf.mxu1 }
 0x162   :  { %v7777_v50 = vpop.f32.mrf.mxu0  ;;  %v5618_v4 = vadd.f32 %v5617_v48, %v5544_v60 }
 0x163   :  { %v5691_v51 = vpop.f32.mrf.mxu1 }
 0x164   :  { %v5765_v52 = vpop.f32.mrf.mxu0  ;;  %v5692_v10 = vadd.f32 %v5691_v51, %v5618_v4 }
 0x165   :  { %v7782_v53 = vpop.f32.mrf.mxu1 }
 0x166   :  { %v7787_v54 = vpop.f32.mrf.mxu0  ;;  %v5766_v17 = vadd.f32 %v5765_v52, %v5692_v10 }
 0x167   :  { %v5837_v55 = vpop.f32.mrf.mxu1  ;;  %v5387_v54 = vadd.f32 %v8366_v43, %v5315_v47  ;;  %v7187_v43 = vld [vmem:[%s8387_s1 + $0x8] sm:$0xff] }
 0x168   :  { %v5913_v56 = vpop.f32.mrf.mxu0  ;;  %v5838_v27 = vadd.f32 %v5837_v55, %v5766_v17 }
 0x169   :  { %v7792_v57 = vpop.f32.mrf.mxu1  ;;  %v5391_v60 = vadd.f32 %v5387_v54, %v8362_v21 }
 0x16a   :  { %v7797_v59 = vpop.f32.mrf.mxu0  ;;  %v6287_v42 = vadd.f32 %v5838_v27, %v5390_v28 }
 0x16b   :  { %v5989_v0 = vpop.f32.mrf.mxu1 }
 0x16c   :  { %v6063_v61 = vpop.f32.mrf.mxu0  ;;  %v5990_v18 = vadd.f32 %v5989_v0, %v5913_v56 }
 0x16d   :  { %v7802_v62 = vpop.f32.mrf.mxu1 }
 0x16e   :  { %v7807_v1 = vpop.f32.mrf.mxu0  ;;  %v6064_v30 = vadd.f32 %v6063_v61, %v5990_v18 }
 0x16f   :  { %v6137_v2 = vpop.f32.mrf.mxu1 }
 0x170   :  { %v6211_v5 = vpop.f32.mrf.mxu0  ;;  %v6138_v44 = vadd.f32 %v6137_v2, %v6064_v30 }
 0x171   :  { %v7812_v6 = vpop.f32.mrf.mxu1 }
 0x172   :  { %v7817_v8 = vpop.f32.mrf.mxu0  ;;  %v6212_v51 = vadd.f32 %v6211_v5, %v6138_v44 }
 0x173   :  { %v6283_v9 = vpop.f32.mrf.mxu1 }
 0x174   :  { %v6364_v11 = vpop.f32.mrf.mxu0  ;;  %v6284_v58 = vadd.f32 %v6283_v9, %v6212_v51 }
 0x175   :  { %v7822_v12 = vpop.f32.mrf.mxu1 }
 0x176   :  { %v7827_v15 = vpop.f32.mrf.mxu0  ;;  %v6288_v1 = vadd.f32 %v6284_v58, %v5391_v60 }
 0x177   :  { %v6440_v16 = vpop.f32.mrf.mxu1 }
 0x178   :  { %v6441_v19 = vadd.f32 %v6440_v16, %v6364_v11  ;;  %v6514_v20 = vpop.f32.mrf.mxu0 }
 0x179   :  { %v7832_v22 = vpop.f32.mrf.mxu1 }
 0x17a   :  { %v6515_v25 = vadd.f32 %v6514_v20, %v6441_v19  ;;  %v7837_v26 = vpop.f32.mrf.mxu0 }
 0x17b   :  { %v6588_v29 = vpop.f32.mrf.mxu1 }
 0x17c   :  { %v6589_v33 = vadd.f32 %v6588_v29, %v6515_v25  ;;  %v6662_v34 = vpop.f32.mrf.mxu0 }
 0x17d   :  { %v7842_v37 = vpop.f32.mrf.mxu1 }
 0x17e   :  { %v6663_v35 = vadd.f32 %v6662_v34, %v6589_v33  ;;  %v7847_v38 = vpop.f32.mrf.mxu0 }
 0x17f   :  { %v6734_v41 = vpop.f32.mrf.mxu1 }
 0x180   :  { %v6735_v45 = vadd.f32 %v6734_v41, %v6663_v35  ;;  %v6810_v46 = vpop.f32.mrf.mxu0 }
 0x181   :  { %v7852_v36 = vpop.f32.mrf.mxu1 }
 0x182   :  { %v7184_v48 = vadd.f32 %v6735_v45, %v6287_v42  ;;  %v7857_v49 = vpop.f32.mrf.mxu0 }
 0x183   :  { %v6886_v50 = vpop.f32.mrf.mxu1 }
 0x184   :  { %v7188_v3 = vadd.f32 %v7186_v31, %v7184_v48  ;;  %v6887_v39 = vadd.f32 %v6886_v50, %v6810_v46  ;;  %v6960_v52 = vpop.f32.mrf.mxu0 }
 0x185   :  { %v7862_v53 = vpop.f32.mrf.mxu1 }
 0x186   :  { %7191 = vst.msk [vmem:[%s8387_s1] sm:$0xff] %vm12_vm1, %v7188_v3  ;;  %v6961_v55 = vadd.f32 %v6960_v52, %v6887_v39  ;;  %v7867_v56 = vpop.f32.mrf.mxu0 }
 0x187   :  { %v7034_v57 = vpop.f32.mrf.mxu1 }
 0x188   :  { %v7035_v40 = vadd.f32 %v7034_v57, %v6961_v55  ;;  %v7108_v59 = vpop.f32.mrf.mxu0 }
 0x189   :  { %v7872_v0 = vpop.f32.mrf.mxu1 }
 0x18a   :  { %v7109_v61 = vadd.f32 %v7108_v59, %v7035_v40  ;;  %v7877_v62 = vpop.f32.mrf.mxu0 }
 0x18b   :  { %v7180_v63 = vpop.f32.mrf.mxu1 }
 0x18c   :  { %v7181_v2 = vadd.f32 %v7180_v63, %v7109_v61 }
 0x18d   :  { %v7882_v4 = vpop.f32.mrf.mxu1 }
 0x18e   :  { %v7185_v5 = vadd.f32 %v7181_v2, %v6288_v1 }
 0x190   :  { %v7189_v6 = vadd.f32 %v7187_v43, %v7185_v5 }
 0x192   :  { %7192 = vst.msk [vmem:[%s8387_s1 + $0x8] sm:$0xff] %vm12_vm1, %v7189_v6 }

// kernel: temporal_attention.3
= control target key start
LH: loop header
LB: loop body
LE: loop exit
PB: predicated region body
PF: predicated region fallthrough
CT: control target
= control target key end

     0   :  { %vm15_vm0 = vcmask 64512   ;;  %v7908_v0 = vmov 0.0   ;;  %vm7909_vm1 = vmmov 0   ;;  %s8519_s1 = inlined_call_operand.vmem [shape: f32[2,8,8,128], index: 1, kind: input, shape index: {}]   ;;  %s8520_s0 = inlined_call_operand.vmem [shape: f32[2,8,8], index: 0, kind: input, shape index: {}]   ;;  %s8521_s2 = inlined_call_operand.vmem [shape: f32[2,8,8,128], index: 2, kind: output, shape index: {}]  }
   0x1   :  { %7426 = vmatprep.subr.mxu0 %v7908_v0  ;;  %v13_v1 = vld [vmem:[%s8519_s1] sm:$0xff]  ;;  %7431 = vmatprep.subr.mxu1 %v7908_v0  ;;  %v12_v6 = vld [vmem:[%s8520_s0 + $0x8] sm:$0xff]  ;;  %v7210_v37 = vld [vmem:[%s8519_s1 + $0x10] sm:$0xff] }
   0x2   :  { %v11_v2 = vld [vmem:[%s8520_s0] sm:$0xff]  ;;  %v50_v4 = vand.u32 4294901760, %v13_v1  ;;  %7428 = vmatprep.mubr.msk.f32.mxu0 %vm7909_vm1, %v7908_v0  ;;  %7433 = vmatprep.mubr.msk.f32.mxu1 %vm7909_vm1, %v7908_v0  ;;  %v466_v9 = vsel %vm15_vm0, %v12_v6, 0  ;;  %v7206_v22 = vld [vmem:[%s8519_s1 + $0x8] sm:$0xff]  ;;  %v8044_v39 = vand.u32 4294901760, %v7210_v37  ;;  %v7211_v43 = vld [vmem:[%s8519_s1 + $0x50] sm:$0xff] }
   0x3   :  { %v14_v3 = vld [vmem:[%s8519_s1 + $0x40] sm:$0xff]  ;;  %v17_v5 = vsel %vm15_vm0, %v11_v2, 0  ;;  %v7951_v12 = vand.u32 4294901760, %v466_v9  ;;  %v7975_v25 = vand.u32 4294901760, %v7206_v22  ;;  %v7207_v31 = vld [vmem:[%s8519_s1 + $0x48] sm:$0xff]  ;;  %v8077_v45 = vand.u32 4294901760, %v7211_v43 }
   0x4   :  { %v7943_v7 = vand.u32 4294901760, %v17_v5  ;;  %v7945_v8 = vand.u32 4294901760, %v14_v3  ;;  %7427 = vmatpush3.msra.mxu0 %v50_v4  ;;  %v127_v10 = vsub.f32 %v13_v1, %v50_v4  ;;  %v8011_v33 = vand.u32 4294901760, %v7207_v31  ;;  %v7214_v49 = vld [vmem:[%s8519_s1 + $0x18] sm:$0xff]  ;;  %v7218_v61 = vld [vmem:[%s8519_s1 + $0x20] sm:$0xff] }
   0x5   :  { %7436 = vmatprep.subr.mxu0 %v7908_v0  ;;  %v7960_v18 = vsub.f32 %v466_v9, %v7951_v12  ;;  %v1027_v28 = vsub.f32 %v7206_v22, %v7975_v25  ;;  %v1925_v41 = vsub.f32 %v7210_v37, %v8044_v39  ;;  %v2371_v47 = vsub.f32 %v7211_v43, %v8077_v45  ;;  %v7215_v55 = vld [vmem:[%s8519_s1 + $0x58] sm:$0xff]  ;;  %v7223_v22 = vld [vmem:[%s8519_s1 + $0x68] sm:$0xff] }
   0x6   :  { %v7949_v11 = vsub.f32 %v17_v5, %v7943_v7  ;;  %v128_v13 = vand.u32 4294901760, %v127_v10  ;;  %v576_v15 = vsub.f32 %v14_v3, %v7945_v8  ;;  %v1473_v35 = vsub.f32 %v7207_v31, %v8011_v33 }
   0x7   :  { %v7970_v23 = vand.u32 4294901760, %v7960_v18  ;;  %v1028_v30 = vand.u32 4294901760, %v1027_v28  ;;  %v1926_v42 = vand.u32 4294901760, %v1925_v41  ;;  %v2372_v48 = vand.u32 4294901760, %v2371_v47 }
   0x8   :  { %v7954_v14 = vand.u32 4294901760, %v7949_v11  ;;  %v129_v16 = vsub.f32 %v127_v10, %v128_v13  ;;  %v577_v21 = vand.u32 4294901760, %v576_v15  ;;  %v1474_v36 = vand.u32 4294901760, %v1473_v35 }
   0x9   :  { %v537_v26 = vsub.f32 %v7960_v18, %v7970_v23  ;;  %v1029_v32 = vsub.f32 %v1027_v28, %v1028_v30  ;;  %v1927_v44 = vsub.f32 %v1925_v41, %v1926_v42  ;;  %v2373_v50 = vsub.f32 %v2371_v47, %v2372_v48 }
   0xa   :  { %v88_v17 = vsub.f32 %v7949_v11, %v7954_v14  ;;  %v130_v19 = vand.u32 4294901760, %v129_v16  ;;  %v578_v24 = vsub.f32 %v576_v15, %v577_v21  ;;  %v1475_v38 = vsub.f32 %v1473_v35, %v1474_v36 }
   0xb   :  { %v7993_v29 = vand.u32 4294901760, %v537_v26  ;;  %v1030_v34 = vand.u32 4294901760, %v1029_v32  ;;  %v1928_v46 = vand.u32 4294901760, %v1927_v44  ;;  %v8110_v51 = vand.u32 4294901760, %v7214_v49 }
   0xc   :  { %v7962_v20 = vand.u32 4294901760, %v88_v17  ;;  %7432 = vmatpush3.msra.mxu1 %v130_v19  ;;  %v579_v27 = vand.u32 4294901760, %v578_v24  ;;  %v1476_v40 = vand.u32 4294901760, %v1475_v38  ;;  %v2374_v52 = vand.u32 4294901760, %v2373_v50 }
   0xd   :  { %7434 = vmatmul.mubr.f32.vlgmr.msra.gmra.mxu1 %v7943_v7  ;;  %7441 = vmatprep.subr.mxu1 %v7908_v0  ;;  %v2823_v53 = vsub.f32 %v7214_v49, %v8110_v51  ;;  %v8143_v57 = vand.u32 4294901760, %v7215_v55  ;;  %v8176_v63 = vand.u32 4294901760, %v7218_v61 }
   0xe   :  { %7429 = vmatmul.mubr.f32.vlgmr.msra.gmra.mxu0 %v7962_v20  ;;  %7442 = vmatpush3.msra.mxu1 %v50_v4 }
   0xf   :  { %7437 = vmatpush3.msra.mxu0 %v127_v10  ;;  %7438 = vmatprep.mubr.msk.f32.mxu0 %vm7909_vm1, %v7908_v0  ;;  %v2824_v54 = vand.u32 4294901760, %v2823_v53  ;;  %v3269_v59 = vsub.f32 %v7215_v55, %v8143_v57  ;;  %v3721_v2 = vsub.f32 %v7218_v61, %v8176_v63 }
  0x10   :  { %7443 = vmatprep.mubr.msk.f32.mxu1 %vm7909_vm1, %v7908_v0  ;;  %7446 = vmatprep.subr.mxu0 %v7908_v0 }
  0x11   :  { %7444 = vmatmul.mubr.f32.vlgmr.msra.gmra.mxu1 %v7954_v14  ;;  %7451 = vmatprep.subr.mxu1 %v7908_v0  ;;  %v2825_v56 = vsub.f32 %v2823_v53, %v2824_v54  ;;  %v3270_v60 = vand.u32 4294901760, %v3269_v59  ;;  %v3722_v3 = vand.u32 4294901760, %v3721_v2 }
  0x12   :  { %7439 = vmatmul.mubr.f32.vlgmr.msra.gmra.mxu0 %v7949_v11  ;;  %7452 = vmatpush3.msra.mxu1 %v50_v4  ;;  %v7219_v4 = vld [vmem:[%s8519_s1 + $0x60] sm:$0xff] }
  0x13   :  { %7447 = vmatpush3.msra.mxu0 %v128_v13  ;;  %7448 = vmatprep.mubr.msk.f32.mxu0 %vm7909_vm1, %v7908_v0  ;;  %v2826_v58 = vand.u32 4294901760, %v2825_v56  ;;  %v3271_v62 = vsub.f32 %v3269_v59, %v3270_v60  ;;  %v3723_v5 = vsub.f32 %v3721_v2, %v3722_v3  ;;  %v8209_v6 = vand.u32 4294901760, %v7219_v4  ;;  %v7222_v13 = vld [vmem:[%s8519_s1 + $0x28] sm:$0xff] }
  0x14   :  { %7453 = vmatprep.mubr.msk.f32.mxu1 %vm7909_vm1, %v7908_v0  ;;  %7456 = vmatprep.subr.mxu0 %v7908_v0  ;;  %v8242_v16 = vand.u32 4294901760, %v7222_v13 }
  0x15   :  { %7454 = vmatmul.mubr.f32.vlgmr.msra.gmra.mxu1 %v7943_v7  ;;  %7461 = vmatprep.subr.mxu1 %v7908_v0  ;;  %v3272_v1 = vand.u32 4294901760, %v3271_v62  ;;  %v4167_v9 = vsub.f32 %v7219_v4, %v8209_v6 }
  0x16   :  { %7449 = vmatmul.mubr.f32.vlgmr.msra.gmra.mxu0 %v7943_v7  ;;  %7462 = vmatpush3.msra.mxu1 %v579_v27  ;;  %v4619_v19 = vsub.f32 %v7222_v13, %v8242_v16 }
  0x17   :  { %7457 = vmatpush3.msra.mxu0 %v7945_v8  ;;  %7458 = vmatprep.mubr.msk.f32.mxu0 %vm7909_vm1, %v7908_v0  ;;  %v4168_v10 = vand.u32 4294901760, %v4167_v9 }
  0x18   :  { %7463 = vmatprep.mubr.msk.f32.mxu1 %vm7909_vm1, %v7908_v0  ;;  %7466 = vmatprep.subr.mxu0 %v7908_v0 }
  0x19   :  { %7464 = vmatmul.mubr.f32.vlgmr.msra.gmra.mxu1 %v7951_v12  ;;  %7471 = vmatprep.subr.mxu1 %v7908_v0 }
  0x1a   :  { %7459 = vmatmul.mubr.f32.vlgmr.msra.gmra.mxu0 %v7993_v29  ;;  %7472 = vmatpush3.msra.mxu1 %v7945_v8 }
  0x1b   :  { %7467 = vmatpush3.msra.mxu0 %v576_v15  ;;  %7468 = vmatprep.mubr.msk.f32.mxu0 %vm7909_vm1, %v7908_v0  ;;  %v4169_v15 = vsub.f32 %v4167_v9, %v4168_v10 }
  0x1c   :  { %7473 = vmatprep.mubr.msk.f32.mxu1 %vm7909_vm1, %v7908_v0  ;;  %7476 = vmatprep.subr.mxu0 %v7908_v0 }
  0x1d   :  { %7474 = vmatmul.mubr.f32.vlgmr.msra.gmra.mxu1 %v7970_v23  ;;  %7481 = vmatprep.subr.mxu1 %v7908_v0  ;;  %v4170_v17 = vand.u32 4294901760, %v4169_v15 }
  0x1e   :  { %7469 = vmatmul.mubr.f32.vlgmr.msra.gmra.mxu0 %v7960_v18  ;;  %7482 = vmatpush3.msra.mxu1 %v7945_v8  ;;  %v3724_v8 = vand.u32 4294901760, %v3723_v5 }
  0x1f   :  { %7477 = vmatpush3.msra.mxu0 %v577_v21  ;;  %7478 = vmatprep.mubr.msk.f32.mxu0 %vm7909_vm1, %v7908_v0  ;;  %v4620_v21 = vand.u32 4294901760, %v4619_v19 }
  0x20   :  { %7483 = vmatprep.mubr.msk.f32.mxu1 %vm7909_vm1, %v7908_v0  ;;  %7486 = vmatprep.subr.mxu0 %v7908_v0 }
  0x21   :  { %7484 = vmatmul.mubr.f32.vlgmr.msra.gmra.mxu1 %v7951_v12  ;;  %7491 = vmatprep.subr.mxu1 %v7908_v0  ;;  %v4621_v24 = vsub.f32 %v4619_v19, %v4620_v21 }
  0x22   :  { %7479 = vmatmul.mubr.f32.vlgmr.msra.gmra.mxu0 %v7951_v12  ;;  %7492 = vmatpush3.msra.mxu1 %v1030_v34 }
  0x23   :  { %7487 = vmatpush3.msra.mxu0 %v7975_v25  ;;  %7488 = vmatprep.mubr.msk.f32.mxu0 %vm7909_vm1, %v7908_v0  ;;  %v4622_v26 = vand.u32 4294901760, %v4621_v24 }
  0x24   :  { %7493 = vmatprep.mubr.msk.f32.mxu1 %vm7909_vm1, %v7908_v0  ;;  %7496 = vmatprep.subr.mxu0 %v7908_v0 }
  0x25   :  { %7494 = vmatmul.mubr.f32.vlgmr.msra.gmra.mxu1 %v7943_v7  ;;  %7501 = vmatprep.subr.mxu1 %v7908_v0 }
  0x26   :  { %7489 = vmatmul.mubr.f32.vlgmr.msra.gmra.mxu0 %v7962_v20  ;;  %7502 = vmatpush3.msra.mxu1 %v7975_v25 }
  0x27   :  { %7497 = vmatpush3.msra.mxu0 %v1027_v28  ;;  %7498 = vmatprep.mubr.msk.f32.mxu0 %vm7909_vm1, %v7908_v0 }
  0x28   :  { %7503 = vmatprep.mubr.msk.f32.mxu1 %vm7909_vm1, %v7908_v0  ;;  %7506 = vmatprep.subr.mxu0 %v7908_v0 }
  0x29   :  { %7504 = vmatmul.mubr.f32.vlgmr.msra.gmra.mxu1 %v7954_v14  ;;  %7511 = vmatprep.subr.mxu1 %v7908_v0 }
  0x2a   :  { %7499 = vmatmul.mubr.f32.vlgmr.msra.gmra.mxu0 %v7949_v11  ;;  %7512 = vmatpush3.msra.mxu1 %v7975_v25  ;;  %v8275_v25 = vand.u32 4294901760, %v7223_v22 }
  0x2b   :  { %7507 = vmatpush3.msra.mxu0 %v1028_v30  ;;  %7508 = vmatprep.mubr.msk.f32.mxu0 %vm7909_vm1, %v7908_v0  ;;  %v7226_v30 = vld [vmem:[%s8519_s1 + $0x30] sm:$0xff] }
  0x2c   :  { %7513 = vmatprep.mubr.msk.f32.mxu1 %vm7909_vm1, %v7908_v0  ;;  %7516 = vmatprep.subr.mxu0 %v7908_v0  ;;  %v5065_v27 = vsub.f32 %v7223_v22, %v8275_v25  ;;  %v8308_v32 = vand.u32 4294901760, %v7226_v30 }
  0x2d   :  { %7514 = vmatmul.mubr.f32.vlgmr.msra.gmra.mxu1 %v7943_v7  ;;  %7521 = vmatprep.subr.mxu1 %v7908_v0 }
  0x2e   :  { %7509 = vmatmul.mubr.f32.vlgmr.msra.gmra.mxu0 %v7943_v7  ;;  %7522 = vmatpush3.msra.mxu1 %v1476_v40  ;;  %v5066_v28 = vand.u32 4294901760, %v5065_v27  ;;  %v5517_v34 = vsub.f32 %v7226_v30, %v8308_v32 }
  0x2f   :  { %7517 = vmatpush3.msra.mxu0 %v8011_v33  ;;  %7518 = vmatprep.mubr.msk.f32.mxu0 %vm7909_vm1, %v7908_v0 }
  0x30   :  { %7523 = vmatprep.mubr.msk.f32.mxu1 %vm7909_vm1, %v7908_v0  ;;  %7526 = vmatprep.subr.mxu0 %v7908_v0  ;;  %v5067_v31 = vsub.f32 %v5065_v27, %v5066_v28 }
  0x31   :  { %7524 = vmatmul.mubr.f32.vlgmr.msra.gmra.mxu1 %v7951_v12  ;;  %7531 = vmatprep.subr.mxu1 %v7908_v0 }
  0x32   :  { %7519 = vmatmul.mubr.f32.vlgmr.msra.gmra.mxu0 %v7993_v29  ;;  %7532 = vmatpush3.msra.mxu1 %v8011_v33 }
  0x33   :  { %7527 = vmatpush3.msra.mxu0 %v1473_v35  ;;  %7528 = vmatprep.mubr.msk.f32.mxu0 %vm7909_vm1, %v7908_v0  ;;  %v5518_v35 = vand.u32 4294901760, %v5517_v34 }
  0x34   :  { %7533 = vmatprep.mubr.msk.f32.mxu1 %vm7909_vm1, %v7908_v0  ;;  %7536 = vmatprep.subr.mxu0 %v7908_v0 }
  0x35   :  { %7534 = vmatmul.mubr.f32.vlgmr.msra.gmra.mxu1 %v7970_v23  ;;  %7541 = vmatprep.subr.mxu1 %v7908_v0  ;;  %v5519_v37 = vsub.f32 %v5517_v34, %v5518_v35 }
  0x36   :  { %7529 = vmatmul.mubr.f32.vlgmr.msra.gmra.mxu0 %v7960_v18  ;;  %7542 = vmatpush3.msra.mxu1 %v8011_v33  ;;  %v5068_v33 = vand.u32 4294901760, %v5067_v31 }
  0x37   :  { %7537 = vmatpush3.msra.mxu0 %v1474_v36  ;;  %7538 = vmatprep.mubr.msk.f32.mxu0 %vm7909_vm1, %v7908_v0  ;;  %v7227_v36 = vld [vmem:[%s8519_s1 + $0x70] sm:$0xff] }
  0x38   :  { %7543 = vmatprep.mubr.msk.f32.mxu1 %vm7909_vm1, %v7908_v0  ;;  %7546 = vmatprep.subr.mxu0 %v7908_v0  ;;  %v8341_v38 = vand.u32 4294901760, %v7227_v36 }
  0x39   :  { %7544 = vmatmul.mubr.f32.vlgmr.msra.gmra.mxu1 %v7951_v12  ;;  %7551 = vmatprep.subr.mxu1 %v7908_v0 }
  0x3a   :  { %7539 = vmatmul.mubr.f32.vlgmr.msra.gmra.mxu0 %v7951_v12  ;;  %7552 = vmatpush3.msra.mxu1 %v1928_v46  ;;  %v5963_v40 = vsub.f32 %v7227_v36, %v8341_v38 }
  0x3b   :  { %7547 = vmatpush3.msra.mxu0 %v8044_v39  ;;  %7548 = vmatprep.mubr.msk.f32.mxu0 %vm7909_vm1, %v7908_v0 }
  0x3c   :  { %7553 = vmatprep.mubr.msk.f32.mxu1 %vm7909_vm1, %v7908_v0  ;;  %7556 = vmatprep.subr.mxu0 %v7908_v0 }
  0x3d   :  { %7554 = vmatmul.mubr.f32.vlgmr.msra.gmra.mxu1 %v7943_v7  ;;  %7561 = vmatprep.subr.mxu1 %v7908_v0 }
  0x3e   :  { %7549 = vmatmul.mubr.f32.vlgmr.msra.gmra.mxu0 %v7962_v20  ;;  %7562 = vmatpush3.msra.mxu1 %v8044_v39 }
  0x3f   :  { %7557 = vmatpush3.msra.mxu0 %v1925_v41  ;;  %7558 = vmatprep.mubr.msk.f32.mxu0 %vm7909_vm1, %v7908_v0  ;;  %v5964_v41 = vand.u32 4294901760, %v5963_v40 }
  0x40   :  { %7563 = vmatprep.mubr.msk.f32.mxu1 %vm7909_vm1, %v7908_v0  ;;  %7566 = vmatprep.subr.mxu0 %v7908_v0 }
  0x41   :  { %7564 = vmatmul.mubr.f32.vlgmr.msra.gmra.mxu1 %v7954_v14  ;;  %7571 = vmatprep.subr.mxu1 %v7908_v0  ;;  %v5965_v43 = vsub.f32 %v5963_v40, %v5964_v41 }
  0x42   :  { %7559 = vmatmul.mubr.f32.vlgmr.msra.gmra.mxu0 %v7949_v11  ;;  %7572 = vmatpush3.msra.mxu1 %v8044_v39  ;;  %v5520_v39 = vand.u32 4294901760, %v5519_v37 }
  0x43   :  { %7567 = vmatpush3.msra.mxu0 %v1926_v42  ;;  %7568 = vmatprep.mubr.msk.f32.mxu0 %vm7909_vm1, %v7908_v0  ;;  %v7230_v42 = vld [vmem:[%s8519_s1 + $0x38] sm:$0xff] }
  0x44   :  { %7573 = vmatprep.mubr.msk.f32.mxu1 %vm7909_vm1, %v7908_v0  ;;  %7576 = vmatprep.subr.mxu0 %v7908_v0  ;;  %v8374_v44 = vand.u32 4294901760, %v7230_v42 }
  0x45   :  { %7574 = vmatmul.mubr.f32.vlgmr.msra.gmra.mxu1 %v7943_v7  ;;  %7581 = vmatprep.subr.mxu1 %v7908_v0 }
  0x46   :  { %7569 = vmatmul.mubr.f32.vlgmr.msra.gmra.mxu0 %v7943_v7  ;;  %7582 = vmatpush3.msra.mxu1 %v2374_v52  ;;  %v6415_v46 = vsub.f32 %v7230_v42, %v8374_v44 }
  0x47   :  { %7577 = vmatpush3.msra.mxu0 %v8077_v45  ;;  %7578 = vmatprep.mubr.msk.f32.mxu0 %vm7909_vm1, %v7908_v0 }
  0x48   :  { %7583 = vmatprep.mubr.msk.f32.mxu1 %vm7909_vm1, %v7908_v0  ;;  %7586 = vmatprep.subr.mxu0 %v7908_v0 }
  0x49   :  { %7584 = vmatmul.mubr.f32.vlgmr.msra.gmra.mxu1 %v7951_v12  ;;  %7591 = vmatprep.subr.mxu1 %v7908_v0 }
  0x4a   :  { %7579 = vmatmul.mubr.f32.vlgmr.msra.gmra.mxu0 %v7993_v29  ;;  %7592 = vmatpush3.msra.mxu1 %v8077_v45 }
  0x4b   :  { %7587 = vmatpush3.msra.mxu0 %v2371_v47  ;;  %7588 = vmatprep.mubr.msk.f32.mxu0 %vm7909_vm1, %v7908_v0  ;;  %v6416_v47 = vand.u32 4294901760, %v6415_v46 }
  0x4c   :  { %7593 = vmatprep.mubr.msk.f32.mxu1 %vm7909_vm1, %v7908_v0  ;;  %7596 = vmatprep.subr.mxu0 %v7908_v0 }
  0x4d   :  { %7594 = vmatmul.mubr.f32.vlgmr.msra.gmra.mxu1 %v7970_v23  ;;  %7601 = vmatprep.subr.mxu1 %v7908_v0  ;;  %v6417_v49 = vsub.f32 %v6415_v46, %v6416_v47 }
  0x4e   :  { %7589 = vmatmul.mubr.f32.vlgmr.msra.gmra.mxu0 %v7960_v18  ;;  %7602 = vmatpush3.msra.mxu1 %v8077_v45  ;;  %v5966_v45 = vand.u32 4294901760, %v5965_v43 }
  0x4f   :  { %7597 = vmatpush3.msra.mxu0 %v2372_v48  ;;  %7598 = vmatprep.mubr.msk.f32.mxu0 %vm7909_vm1, %v7908_v0  ;;  %v7231_v48 = vld [vmem:[%s8519_s1 + $0x78] sm:$0xff] }
  0x50   :  { %7603 = vmatprep.mubr.msk.f32.mxu1 %vm7909_vm1, %v7908_v0  ;;  %7606 = vmatprep.subr.mxu0 %v7908_v0  ;;  %v6784_v50 = vand.u32 4294901760, %v7231_v48 }
  0x51   :  { %7604 = vmatmul.mubr.f32.vlgmr.msra.gmra.mxu1 %v7951_v12  ;;  %7611 = vmatprep.subr.mxu1 %v7908_v0 }
  0x52   :  { %7599 = vmatmul.mubr.f32.vlgmr.msra.gmra.mxu0 %v7951_v12  ;;  %7612 = vmatpush3.msra.mxu1 %v2826_v58  ;;  %v6861_v52 = vsub.f32 %v7231_v48, %v6784_v50 }
  0x53   :  { %7607 = vmatpush3.msra.mxu0 %v8110_v51  ;;  %7608 = vmatprep.mubr.msk.f32.mxu0 %vm7909_vm1, %v7908_v0 }
  0x54   :  { %7613 = vmatprep.mubr.msk.f32.mxu1 %vm7909_vm1, %v7908_v0  ;;  %7616 = vmatprep.subr.mxu0 %v7908_v0 }
  0x55   :  { %7614 = vmatmul.mubr.f32.vlgmr.msra.gmra.mxu1 %v7943_v7  ;;  %7621 = vmatprep.subr.mxu1 %v7908_v0 }
  0x56   :  { %7609 = vmatmul.mubr.f32.vlgmr.msra.gmra.mxu0 %v7962_v20  ;;  %7622 = vmatpush3.msra.mxu1 %v8110_v51 }
  0x57   :  { %7617 = vmatpush3.msra.mxu0 %v2823_v53  ;;  %7618 = vmatprep.mubr.msk.f32.mxu0 %vm7909_vm1, %v7908_v0  ;;  %v6862_v53 = vand.u32 4294901760, %v6861_v52 }
  0x58   :  { %7623 = vmatprep.mubr.msk.f32.mxu1 %vm7909_vm1, %v7908_v0  ;;  %7626 = vmatprep.subr.mxu0 %v7908_v0 }
  0x59   :  { %7624 = vmatmul.mubr.f32.vlgmr.msra.gmra.mxu1 %v7954_v14  ;;  %7631 = vmatprep.subr.mxu1 %v7908_v0 }
  0x5a   :  { %7619 = vmatmul.mubr.f32.vlgmr.msra.gmra.mxu0 %v7949_v11  ;;  %7632 = vmatpush3.msra.mxu1 %v8110_v51  ;;  %v6418_v51 = vand.u32 4294901760, %v6417_v49 }
  0x5b   :  { %7627 = vmatpush3.msra.mxu0 %v2824_v54  ;;  %7628 = vmatprep.mubr.msk.f32.mxu0 %vm7909_vm1, %v7908_v0  ;;  %v6863_v54 = vsub.f32 %v6861_v52, %v6862_v53 }
  0x5c   :  { %7633 = vmatprep.mubr.msk.f32.mxu1 %vm7909_vm1, %v7908_v0  ;;  %7636 = vmatprep.subr.mxu0 %v7908_v0 }
  0x5d   :  { %7634 = vmatmul.mubr.f32.vlgmr.msra.gmra.mxu1 %v7943_v7  ;;  %7641 = vmatprep.subr.mxu1 %v7908_v0 }
  0x5e   :  { %7629 = vmatmul.mubr.f32.vlgmr.msra.gmra.mxu0 %v7943_v7  ;;  %7642 = vmatpush3.msra.mxu1 %v3272_v1 }
  0x5f   :  { %7637 = vmatpush3.msra.mxu0 %v8143_v57  ;;  %7638 = vmatprep.mubr.msk.f32.mxu0 %vm7909_vm1, %v7908_v0 }
  0x60   :  { %7643 = vmatprep.mubr.msk.f32.mxu1 %vm7909_vm1, %v7908_v0  ;;  %7646 = vmatprep.subr.mxu0 %v7908_v0 }
  0x61   :  { %7644 = vmatmul.mubr.f32.vlgmr.msra.gmra.mxu1 %v7951_v12  ;;  %7651 = vmatprep.subr.mxu1 %v7908_v0 }
  0x62   :  { %7639 = vmatmul.mubr.f32.vlgmr.msra.gmra.mxu0 %v7993_v29  ;;  %7652 = vmatpush3.msra.mxu1 %v8143_v57 }
  0x63   :  { %7647 = vmatpush3.msra.mxu0 %v3269_v59  ;;  %7648 = vmatprep.mubr.msk.f32.mxu0 %vm7909_vm1, %v7908_v0 }
  0x64   :  { %7653 = vmatprep.mubr.msk.f32.mxu1 %vm7909_vm1, %v7908_v0  ;;  %7656 = vmatprep.subr.mxu0 %v7908_v0 }
  0x65   :  { %7654 = vmatmul.mubr.f32.vlgmr.msra.gmra.mxu1 %v7970_v23  ;;  %7661 = vmatprep.subr.mxu1 %v7908_v0 }
  0x66   :  { %7649 = vmatmul.mubr.f32.vlgmr.msra.gmra.mxu0 %v7960_v18  ;;  %7662 = vmatpush3.msra.mxu1 %v8143_v57 }
  0x67   :  { %7657 = vmatpush3.msra.mxu0 %v3270_v60  ;;  %7658 = vmatprep.mubr.msk.f32.mxu0 %vm7909_vm1, %v7908_v0 }
  0x68   :  { %7663 = vmatprep.mubr.msk.f32.mxu1 %vm7909_vm1, %v7908_v0  ;;  %7666 = vmatprep.subr.mxu0 %v7908_v0 }
  0x69   :  { %7664 = vmatmul.mubr.f32.vlgmr.msra.gmra.mxu1 %v7951_v12  ;;  %7671 = vmatprep.subr.mxu1 %v7908_v0 }
  0x6a   :  { %7659 = vmatmul.mubr.f32.vlgmr.msra.gmra.mxu0 %v7951_v12  ;;  %7672 = vmatpush3.msra.mxu1 %v3724_v8 }
  0x6b   :  { %7667 = vmatpush3.msra.mxu0 %v8176_v63  ;;  %7668 = vmatprep.mubr.msk.f32.mxu0 %vm7909_vm1, %v7908_v0 }
  0x6c   :  { %7673 = vmatprep.mubr.msk.f32.mxu1 %vm7909_vm1, %v7908_v0  ;;  %7676 = vmatprep.subr.mxu0 %v7908_v0 }
  0x6d   :  { %7674 = vmatmul.mubr.f32.vlgmr.msra.gmra.mxu1 %v7943_v7  ;;  %7681 = vmatprep.subr.mxu1 %v7908_v0 }
  0x6e   :  { %7669 = vmatmul.mubr.f32.vlgmr.msra.gmra.mxu0 %v7962_v20  ;;  %7682 = vmatpush3.msra.mxu1 %v8176_v63 }
  0x6f   :  { %7677 = vmatpush3.msra.mxu0 %v3721_v2  ;;  %7678 = vmatprep.mubr.msk.f32.mxu0 %vm7909_vm1, %v7908_v0 }
  0x70   :  { %7683 = vmatprep.mubr.msk.f32.mxu1 %vm7909_vm1, %v7908_v0  ;;  %7686 = vmatprep.subr.mxu0 %v7908_v0 }
  0x71   :  { %7684 = vmatmul.mubr.f32.vlgmr.msra.gmra.mxu1 %v7954_v14  ;;  %7691 = vmatprep.subr.mxu1 %v7908_v0 }
  0x72   :  { %7679 = vmatmul.mubr.f32.vlgmr.msra.gmra.mxu0 %v7949_v11  ;;  %7692 = vmatpush3.msra.mxu1 %v8176_v63 }
  0x73   :  { %7687 = vmatpush3.msra.mxu0 %v3722_v3  ;;  %7688 = vmatprep.mubr.msk.f32.mxu0 %vm7909_vm1, %v7908_v0 }
  0x74   :  { %7693 = vmatprep.mubr.msk.f32.mxu1 %vm7909_vm1, %v7908_v0  ;;  %7696 = vmatprep.subr.mxu0 %v7908_v0 }
  0x75   :  { %7694 = vmatmul.mubr.f32.vlgmr.msra.gmra.mxu1 %v7943_v7  ;;  %7701 = vmatprep.subr.mxu1 %v7908_v0 }
  0x76   :  { %7689 = vmatmul.mubr.f32.vlgmr.msra.gmra.mxu0 %v7943_v7  ;;  %7702 = vmatpush3.msra.mxu1 %v4170_v17 }
  0x77   :  { %7697 = vmatpush3.msra.mxu0 %v8209_v6  ;;  %7698 = vmatprep.mubr.msk.f32.mxu0 %vm7909_vm1, %v7908_v0 }
  0x78   :  { %7703 = vmatprep.mubr.msk.f32.mxu1 %vm7909_vm1, %v7908_v0  ;;  %7706 = vmatprep.subr.mxu0 %v7908_v0 }
  0x79   :  { %7704 = vmatmul.mubr.f32.vlgmr.msra.gmra.mxu1 %v7951_v12  ;;  %7711 = vmatprep.subr.mxu1 %v7908_v0 }
  0x7a   :  { %7699 = vmatmul.mubr.f32.vlgmr.msra.gmra.mxu0 %v7993_v29  ;;  %7712 = vmatpush3.msra.mxu1 %v8209_v6 }
  0x7b   :  { %7707 = vmatpush3.msra.mxu0 %v4167_v9  ;;  %7708 = vmatprep.mubr.msk.f32.mxu0 %vm7909_vm1, %v7908_v0 }
  0x7c   :  { %7713 = vmatprep.mubr.msk.f32.mxu1 %vm7909_vm1, %v7908_v0  ;;  %7716 = vmatprep.subr.mxu0 %v7908_v0 }
  0x7d   :  { %7714 = vmatmul.mubr.f32.vlgmr.msra.gmra.mxu1 %v7970_v23  ;;  %7721 = vmatprep.subr.mxu1 %v7908_v0 }
  0x7e   :  { %7709 = vmatmul.mubr.f32.vlgmr.msra.gmra.mxu0 %v7960_v18  ;;  %7722 = vmatpush3.msra.mxu1 %v8209_v6 }
  0x7f   :  { %7717 = vmatpush3.msra.mxu0 %v4168_v10  ;;  %7718 = vmatprep.mubr.msk.f32.mxu0 %vm7909_vm1, %v7908_v0 }
  0x80   :  { %7723 = vmatprep.mubr.msk.f32.mxu1 %vm7909_vm1, %v7908_v0  ;;  %7726 = vmatprep.subr.mxu0 %v7908_v0 }
  0x81   :  { %7724 = vmatmul.mubr.f32.vlgmr.msra.gmra.mxu1 %v7951_v12  ;;  %7731 = vmatprep.subr.mxu1 %v7908_v0 }
  0x82   :  { %7719 = vmatmul.mubr.f32.vlgmr.msra.gmra.mxu0 %v7951_v12  ;;  %7732 = vmatpush3.msra.mxu1 %v4622_v26 }
  0x83   :  { %7727 = vmatpush3.msra.mxu0 %v8242_v16  ;;  %7728 = vmatprep.mubr.msk.f32.mxu0 %vm7909_vm1, %v7908_v0 }
  0x84   :  { %7733 = vmatprep.mubr.msk.f32.mxu1 %vm7909_vm1, %v7908_v0  ;;  %7736 = vmatprep.subr.mxu0 %v7908_v0 }
  0x85   :  { %7734 = vmatmul.mubr.f32.vlgmr.msra.gmra.mxu1 %v7943_v7  ;;  %7741 = vmatprep.subr.mxu1 %v7908_v0 }
  0x86   :  { %7729 = vmatmul.mubr.f32.vlgmr.msra.gmra.mxu0 %v7962_v20  ;;  %7742 = vmatpush3.msra.mxu1 %v8242_v16 }
  0x87   :  { %7737 = vmatpush3.msra.mxu0 %v4619_v19  ;;  %7738 = vmatprep.mubr.msk.f32.mxu0 %vm7909_vm1, %v7908_v0 }
  0x88   :  { %7743 = vmatprep.mubr.msk.f32.mxu1 %vm7909_vm1, %v7908_v0  ;;  %7746 = vmatprep.subr.mxu0 %v7908_v0 }
  0x89   :  { %7744 = vmatmul.mubr.f32.vlgmr.msra.gmra.mxu1 %v7954_v14  ;;  %7751 = vmatprep.subr.mxu1 %v7908_v0 }
  0x8a   :  { %7739 = vmatmul.mubr.f32.vlgmr.msra.gmra.mxu0 %v7949_v11  ;;  %7752 = vmatpush3.msra.mxu1 %v8242_v16 }
  0x8b   :  { %7747 = vmatpush3.msra.mxu0 %v4620_v21  ;;  %7748 = vmatprep.mubr.msk.f32.mxu0 %vm7909_vm1, %v7908_v0 }
  0x8c   :  { %7753 = vmatprep.mubr.msk.f32.mxu1 %vm7909_vm1, %v7908_v0  ;;  %7756 = vmatprep.subr.mxu0 %v7908_v0 }
  0x8d   :  { %7754 = vmatmul.mubr.f32.vlgmr.msra.gmra.mxu1 %v7943_v7  ;;  %7761 = vmatprep.subr.mxu1 %v7908_v0 }
  0x8e   :  { %7749 = vmatmul.mubr.f32.vlgmr.msra.gmra.mxu0 %v7943_v7  ;;  %7762 = vmatpush3.msra.mxu1 %v5068_v33 }
  0x8f   :  { %7757 = vmatpush3.msra.mxu0 %v8275_v25  ;;  %7758 = vmatprep.mubr.msk.f32.mxu0 %vm7909_vm1, %v7908_v0 }
  0x90   :  { %7763 = vmatprep.mubr.msk.f32.mxu1 %vm7909_vm1, %v7908_v0  ;;  %7766 = vmatprep.subr.mxu0 %v7908_v0 }
  0x91   :  { %7764 = vmatmul.mubr.f32.vlgmr.msra.gmra.mxu1 %v7951_v12  ;;  %7771 = vmatprep.subr.mxu1 %v7908_v0 }
  0x92   :  { %7759 = vmatmul.mubr.f32.vlgmr.msra.gmra.mxu0 %v7993_v29  ;;  %7772 = vmatpush3.msra.mxu1 %v8275_v25 }
  0x93   :  { %7767 = vmatpush3.msra.mxu0 %v5065_v27  ;;  %7768 = vmatprep.mubr.msk.f32.mxu0 %vm7909_vm1, %v7908_v0 }
  0x94   :  { %7773 = vmatprep.mubr.msk.f32.mxu1 %vm7909_vm1, %v7908_v0  ;;  %7776 = vmatprep.subr.mxu0 %v7908_v0 }
  0x95   :  { %7774 = vmatmul.mubr.f32.vlgmr.msra.gmra.mxu1 %v7970_v23  ;;  %7781 = vmatprep.subr.mxu1 %v7908_v0 }
  0x96   :  { %7769 = vmatmul.mubr.f32.vlgmr.msra.gmra.mxu0 %v7960_v18  ;;  %7782 = vmatpush3.msra.mxu1 %v8275_v25 }
  0x97   :  { %7777 = vmatpush3.msra.mxu0 %v5066_v28  ;;  %7778 = vmatprep.mubr.msk.f32.mxu0 %vm7909_vm1, %v7908_v0 }
  0x98   :  { %7783 = vmatprep.mubr.msk.f32.mxu1 %vm7909_vm1, %v7908_v0  ;;  %7786 = vmatprep.subr.mxu0 %v7908_v0 }
  0x99   :  { %7784 = vmatmul.mubr.f32.vlgmr.msra.gmra.mxu1 %v7951_v12  ;;  %7791 = vmatprep.subr.mxu1 %v7908_v0 }
  0x9a   :  { %7779 = vmatmul.mubr.f32.vlgmr.msra.gmra.mxu0 %v7951_v12  ;;  %7792 = vmatpush3.msra.mxu1 %v5520_v39 }
  0x9b   :  { %7787 = vmatpush3.msra.mxu0 %v8308_v32  ;;  %7788 = vmatprep.mubr.msk.f32.mxu0 %vm7909_vm1, %v7908_v0 }
  0x9c   :  { %7793 = vmatprep.mubr.msk.f32.mxu1 %vm7909_vm1, %v7908_v0  ;;  %7796 = vmatprep.subr.mxu0 %v7908_v0 }
  0x9d   :  { %7794 = vmatmul.mubr.f32.vlgmr.msra.gmra.mxu1 %v7943_v7  ;;  %7801 = vmatprep.subr.mxu1 %v7908_v0 }
  0x9e   :  { %7789 = vmatmul.mubr.f32.vlgmr.msra.gmra.mxu0 %v7962_v20  ;;  %7802 = vmatpush3.msra.mxu1 %v8308_v32 }
  0x9f   :  { %7797 = vmatpush3.msra.mxu0 %v5517_v34  ;;  %7798 = vmatprep.mubr.msk.f32.mxu0 %vm7909_vm1, %v7908_v0 }
  0xa0   :  { %7803 = vmatprep.mubr.msk.f32.mxu1 %vm7909_vm1, %v7908_v0  ;;  %7806 = vmatprep.subr.mxu0 %v7908_v0 }
  0xa1   :  { %7804 = vmatmul.mubr.f32.vlgmr.msra.gmra.mxu1 %v7954_v14  ;;  %7811 = vmatprep.subr.mxu1 %v7908_v0 }
  0xa2   :  { %7799 = vmatmul.mubr.f32.vlgmr.msra.gmra.mxu0 %v7949_v11  ;;  %7812 = vmatpush3.msra.mxu1 %v8308_v32 }
  0xa3   :  { %7807 = vmatpush3.msra.mxu0 %v5518_v35  ;;  %7808 = vmatprep.mubr.msk.f32.mxu0 %vm7909_vm1, %v7908_v0 }
  0xa4   :  { %7813 = vmatprep.mubr.msk.f32.mxu1 %vm7909_vm1, %v7908_v0  ;;  %7816 = vmatprep.subr.mxu0 %v7908_v0 }
  0xa5   :  { %7814 = vmatmul.mubr.f32.vlgmr.msra.gmra.mxu1 %v7943_v7  ;;  %7821 = vmatprep.subr.mxu1 %v7908_v0 }
  0xa6   :  { %7809 = vmatmul.mubr.f32.vlgmr.msra.gmra.mxu0 %v7943_v7  ;;  %7822 = vmatpush3.msra.mxu1 %v5966_v45 }
  0xa7   :  { %7817 = vmatpush3.msra.mxu0 %v8341_v38  ;;  %7818 = vmatprep.mubr.msk.f32.mxu0 %vm7909_vm1, %v7908_v0 }
  0xa8   :  { %7823 = vmatprep.mubr.msk.f32.mxu1 %vm7909_vm1, %v7908_v0  ;;  %7826 = vmatprep.subr.mxu0 %v7908_v0 }
  0xa9   :  { %7824 = vmatmul.mubr.f32.vlgmr.msra.gmra.mxu1 %v7951_v12  ;;  %7831 = vmatprep.subr.mxu1 %v7908_v0 }
  0xaa   :  { %7819 = vmatmul.mubr.f32.vlgmr.msra.gmra.mxu0 %v7993_v29  ;;  %7832 = vmatpush3.msra.mxu1 %v8341_v38 }
  0xab   :  { %7827 = vmatpush3.msra.mxu0 %v5963_v40  ;;  %7828 = vmatprep.mubr.msk.f32.mxu0 %vm7909_vm1, %v7908_v0 }
  0xac   :  { %7833 = vmatprep.mubr.msk.f32.mxu1 %vm7909_vm1, %v7908_v0  ;;  %7836 = vmatprep.subr.mxu0 %v7908_v0 }
  0xad   :  { %7834 = vmatmul.mubr.f32.vlgmr.msra.gmra.mxu1 %v7970_v23  ;;  %7841 = vmatprep.subr.mxu1 %v7908_v0 }
  0xae   :  { %7829 = vmatmul.mubr.f32.vlgmr.msra.gmra.mxu0 %v7960_v18  ;;  %7842 = vmatpush3.msra.mxu1 %v8341_v38 }
  0xaf   :  { %7837 = vmatpush3.msra.mxu0 %v5964_v41  ;;  %7838 = vmatprep.mubr.msk.f32.mxu0 %vm7909_vm1, %v7908_v0 }
  0xb0   :  { %7843 = vmatprep.mubr.msk.f32.mxu1 %vm7909_vm1, %v7908_v0  ;;  %7846 = vmatprep.subr.mxu0 %v7908_v0 }
  0xb1   :  { %7844 = vmatmul.mubr.f32.vlgmr.msra.gmra.mxu1 %v7951_v12  ;;  %7851 = vmatprep.subr.mxu1 %v7908_v0 }
  0xb2   :  { %7839 = vmatmul.mubr.f32.vlgmr.msra.gmra.mxu0 %v7951_v12  ;;  %7852 = vmatpush3.msra.mxu1 %v6418_v51 }
  0xb3   :  { %7847 = vmatpush3.msra.mxu0 %v8374_v44  ;;  %7848 = vmatprep.mubr.msk.f32.mxu0 %vm7909_vm1, %v7908_v0 }
  0xb4   :  { %7853 = vmatprep.mubr.msk.f32.mxu1 %vm7909_vm1, %v7908_v0  ;;  %7856 = vmatprep.subr.mxu0 %v7908_v0 }
  0xb5   :  { %7854 = vmatmul.mubr.f32.vlgmr.msra.gmra.mxu1 %v7943_v7  ;;  %7861 = vmatprep.subr.mxu1 %v7908_v0 }
  0xb6   :  { %7849 = vmatmul.mubr.f32.vlgmr.msra.gmra.mxu0 %v7962_v20  ;;  %7862 = vmatpush3.msra.mxu1 %v8374_v44  ;;  %v6864_v20 = vand.u32 4294901760, %v6863_v54 }
  0xb7   :  { %7857 = vmatpush3.msra.mxu0 %v6415_v46  ;;  %7858 = vmatprep.mubr.msk.f32.mxu0 %vm7909_vm1, %v7908_v0 }
  0xb8   :  { %7863 = vmatprep.mubr.msk.f32.mxu1 %vm7909_vm1, %v7908_v0  ;;  %7866 = vmatprep.subr.mxu0 %v7908_v0 }
  0xb9   :  { %7864 = vmatmul.mubr.f32.vlgmr.msra.gmra.mxu1 %v7954_v14  ;;  %7871 = vmatprep.subr.mxu1 %v7908_v0 }
  0xba   :  { %7859 = vmatmul.mubr.f32.vlgmr.msra.gmra.mxu0 %v7949_v11  ;;  %7872 = vmatpush3.msra.mxu1 %v8374_v44 }
  0xbb   :  { %7867 = vmatpush3.msra.mxu0 %v6416_v47  ;;  %7868 = vmatprep.mubr.msk.f32.mxu0 %vm7909_vm1, %v7908_v0 }
  0xbc   :  { %7873 = vmatprep.mubr.msk.f32.mxu1 %vm7909_vm1, %v7908_v0  ;;  %7876 = vmatprep.subr.mxu0 %v7908_v0 }
  0xbd   :  { %7874 = vmatmul.mubr.f32.vlgmr.msra.gmra.mxu1 %v7943_v7  ;;  %7881 = vmatprep.subr.mxu1 %v7908_v0 }
  0xbe   :  { %7869 = vmatmul.mubr.f32.vlgmr.msra.gmra.mxu0 %v7943_v7  ;;  %7882 = vmatpush3.msra.mxu1 %v6864_v20 }
  0xbf   :  { %7877 = vmatpush3.msra.mxu0 %v6784_v50  ;;  %7878 = vmatprep.mubr.msk.f32.mxu0 %vm7909_vm1, %v7908_v0 }
  0xc0   :  { %7883 = vmatprep.mubr.msk.f32.mxu1 %vm7909_vm1, %v7908_v0  ;;  %7886 = vmatprep.subr.mxu0 %v7908_v0 }
  0xc1   :  { %7884 = vmatmul.mubr.f32.vlgmr.msra.gmra.mxu1 %v7951_v12  ;;  %7891 = vmatprep.subr.mxu1 %v7908_v0 }
  0xc2   :  { %7879 = vmatmul.mubr.f32.vlgmr.msra.gmra.mxu0 %v7993_v29  ;;  %7892 = vmatpush3.msra.mxu1 %v6784_v50 }
  0xc3   :  { %7887 = vmatpush3.msra.mxu0 %v6861_v52  ;;  %7888 = vmatprep.mubr.msk.f32.mxu0 %vm7909_vm1, %v7908_v0 }
  0xc4   :  { %7893 = vmatprep.mubr.msk.f32.mxu1 %vm7909_vm1, %v7908_v0  ;;  %7896 = vmatprep.subr.mxu0 %v7908_v0 }
  0xc5   :  { %7894 = vmatmul.mubr.f32.vlgmr.msra.gmra.mxu1 %v7970_v23  ;;  %7901 = vmatprep.subr.mxu1 %v7908_v0 }
  0xc6   :  { %7889 = vmatmul.mubr.f32.vlgmr.msra.gmra.mxu0 %v7960_v18  ;;  %7902 = vmatpush3.msra.mxu1 %v6784_v50 }
  0xc7   :  { %7897 = vmatpush3.msra.mxu0 %v6862_v53  ;;  %7898 = vmatprep.mubr.msk.f32.mxu0 %vm7909_vm1, %v7908_v0 }
  0xc8   :  { %7903 = vmatprep.mubr.msk.f32.mxu1 %vm7909_vm1, %v7908_v0 }
  0xc9   :  { %7904 = vmatmul.mubr.f32.vlgmr.msra.gmra.mxu1 %v7951_v12 }
  0xca   :  { %7899 = vmatmul.mubr.f32.vlgmr.msra.gmra.mxu0 %v7951_v12 }
  0xcd   :  { %v167_v11 = vpop.f32.mrf.mxu1 }
  0xce   :  { %v91_v7 = vpop.f32.mrf.mxu0 }
  0xcf   :  { %v7435_v18 = vpop.f32.mrf.mxu1  ;;  %v168_v29 = vadd.f32 %v167_v11, %v91_v7 }
  0xd0   :  { %v7430_v14 = vpop.f32.mrf.mxu0 }
  0xd1   :  { %v315_v55 = vpop.f32.mrf.mxu1 }
  0xd2   :  { %v241_v23 = vpop.f32.mrf.mxu0 }
  0xd3   :  { %v242_v56 = vadd.f32 %v241_v23, %v168_v29  ;;  %v7445_v58 = vpop.f32.mrf.mxu1 }
  0xd4   :  { %v7440_v57 = vpop.f32.mrf.mxu0 }
  0xd5   :  { %v316_v59 = vadd.f32 %v315_v55, %v242_v56  ;;  %v461_v61 = vpop.f32.mrf.mxu1 }
  0xd6   :  { %v389_v60 = vpop.f32.mrf.mxu0 }
  0xd7   :  { %v390_v62 = vadd.f32 %v389_v60, %v316_v59  ;;  %v7455_v0 = vpop.f32.mrf.mxu1 }
  0xd8   :  { %v7450_v63 = vpop.f32.mrf.mxu0 }
  0xd9   :  { %v462_v1 = vadd.f32 %v461_v61, %v390_v62  ;;  %v616_v3 = vpop.f32.mrf.mxu1 }
  0xda   :  { %v540_v2 = vpop.f32.mrf.mxu0 }
  0xdb   :  { %914 = vst [vmem:[%s8521_s2] sm:$0xff] %v462_v1  ;;  %v7465_v4 = vpop.f32.mrf.mxu1  ;;  %v617_v5 = vadd.f32 %v616_v3, %v540_v2 }
  0xdc   :  { %v7460_v12 = vpop.f32.mrf.mxu0 }
  0xdd   :  { %v764_v8 = vpop.f32.mrf.mxu1 }
  0xde   :  { %v690_v6 = vpop.f32.mrf.mxu0 }
  0xdf   :  { %v691_v9 = vadd.f32 %v690_v6, %v617_v5  ;;  %v7475_v13 = vpop.f32.mrf.mxu1 }
  0xe0   :  { %v7470_v10 = vpop.f32.mrf.mxu0 }
  0xe1   :  { %v765_v15 = vadd.f32 %v764_v8, %v691_v9  ;;  %v910_v17 = vpop.f32.mrf.mxu1 }
  0xe2   :  { %v838_v16 = vpop.f32.mrf.mxu0 }
  0xe3   :  { %v839_v19 = vadd.f32 %v838_v16, %v765_v15  ;;  %v7485_v22 = vpop.f32.mrf.mxu1 }
  0xe4   :  { %v7480_v21 = vpop.f32.mrf.mxu0 }
  0xe5   :  { %v911_v24 = vadd.f32 %v910_v17, %v839_v19  ;;  %v1067_v26 = vpop.f32.mrf.mxu1 }
  0xe6   :  { %v991_v25 = vpop.f32.mrf.mxu0 }
  0xe7   :  { %915 = vst [vmem:[%s8521_s2 + $0x40] sm:$0xff] %v911_v24  ;;  %v7495_v28 = vpop.f32.mrf.mxu1  ;;  %v1068_v30 = vadd.f32 %v1067_v26, %v991_v25 }
  0xe8   :  { %v7490_v27 = vpop.f32.mrf.mxu0 }
  0xe9   :  { %v1215_v32 = vpop.f32.mrf.mxu1 }
  0xea   :  { %v1141_v31 = vpop.f32.mrf.mxu0 }
  0xeb   :  { %v1142_v33 = vadd.f32 %v1141_v31, %v1068_v30  ;;  %v7505_v35 = vpop.f32.mrf.mxu1 }
  0xec   :  { %v7500_v34 = vpop.f32.mrf.mxu0 }
  0xed   :  { %v1216_v36 = vadd.f32 %v1215_v32, %v1142_v33  ;;  %v1361_v38 = vpop.f32.mrf.mxu1 }
  0xee   :  { %v1289_v37 = vpop.f32.mrf.mxu0 }
  0xef   :  { %v1290_v39 = vadd.f32 %v1289_v37, %v1216_v36  ;;  %v7515_v41 = vpop.f32.mrf.mxu1 }
  0xf0   :  { %v7510_v40 = vpop.f32.mrf.mxu0 }
  0xf1   :  { %v1362_v42 = vadd.f32 %v1361_v38, %v1290_v39  ;;  %v1513_v44 = vpop.f32.mrf.mxu1 }
  0xf2   :  { %v1437_v43 = vpop.f32.mrf.mxu0 }
  0xf3   :  { %7208 = vst [vmem:[%s8521_s2 + $0x8] sm:$0xff] %v1362_v42  ;;  %v7525_v46 = vpop.f32.mrf.mxu1  ;;  %v1514_v47 = vadd.f32 %v1513_v44, %v1437_v43 }
  0xf4   :  { %v7520_v45 = vpop.f32.mrf.mxu0 }
  0xf5   :  { %v1661_v49 = vpop.f32.mrf.mxu1 }
  0xf6   :  { %v1587_v48 = vpop.f32.mrf.mxu0 }
  0xf7   :  { %v1588_v50 = vadd.f32 %v1587_v48, %v1514_v47  ;;  %v7535_v52 = vpop.f32.mrf.mxu1 }
  0xf8   :  { %v7530_v51 = vpop.f32.mrf.mxu0 }
  0xf9   :  { %v1662_v53 = vadd.f32 %v1661_v49, %v1588_v50  ;;  %v1807_v20 = vpop.f32.mrf.mxu1 }
  0xfa   :  { %v1735_v54 = vpop.f32.mrf.mxu0 }
  0xfb   :  { %v1736_v7 = vadd.f32 %v1735_v54, %v1662_v53  ;;  %v7545_v14 = vpop.f32.mrf.mxu1 }
  0xfc   :  { %v7540_v11 = vpop.f32.mrf.mxu0 }
  0xfd   :  { %v1808_v18 = vadd.f32 %v1807_v20, %v1736_v7  ;;  %v1965_v23 = vpop.f32.mrf.mxu1 }
  0xfe   :  { %v1889_v29 = vpop.f32.mrf.mxu0 }
  0xff   :  { %7209 = vst [vmem:[%s8521_s2 + $0x48] sm:$0xff] %v1808_v18  ;;  %v7555_v56 = vpop.f32.mrf.mxu1  ;;  %v1966_v57 = vadd.f32 %v1965_v23, %v1889_v29 }
 0x100   :  { %v7550_v55 = vpop.f32.mrf.mxu0 }
 0x101   :  { %v2113_v59 = vpop.f32.mrf.mxu1 }
 0x102   :  { %v2039_v58 = vpop.f32.mrf.mxu0 }
 0x103   :  { %v2040_v60 = vadd.f32 %v2039_v58, %v1966_v57  ;;  %v7565_v62 = vpop.f32.mrf.mxu1 }
 0x104   :  { %v7560_v61 = vpop.f32.mrf.mxu0 }
 0x105   :  { %v2114_v63 = vadd.f32 %v2113_v59, %v2040_v60  ;;  %v2259_v1 = vpop.f32.mrf.mxu1 }
 0x106   :  { %v2187_v0 = vpop.f32.mrf.mxu0 }
 0x107   :  { %v2188_v2 = vadd.f32 %v2187_v0, %v2114_v63  ;;  %v7575_v12 = vpop.f32.mrf.mxu1 }
 0x108   :  { %v7570_v3 = vpop.f32.mrf.mxu0 }
 0x109   :  { %v2260_v4 = vadd.f32 %v2259_v1, %v2188_v2  ;;  %v2411_v6 = vpop.f32.mrf.mxu1 }
 0x10a   :  { %v2335_v5 = vpop.f32.mrf.mxu0 }
 0x10b   :  { %7212 = vst [vmem:[%s8521_s2 + $0x10] sm:$0xff] %v2260_v4  ;;  %v7585_v9 = vpop.f32.mrf.mxu1  ;;  %v2412_v10 = vadd.f32 %v2411_v6, %v2335_v5 }
 0x10c   :  { %v7580_v8 = vpop.f32.mrf.mxu0 }
 0x10d   :  { %v2559_v15 = vpop.f32.mrf.mxu1 }
 0x10e   :  { %v2485_v13 = vpop.f32.mrf.mxu0 }
 0x10f   :  { %v2486_v16 = vadd.f32 %v2485_v13, %v2412_v10  ;;  %v7595_v19 = vpop.f32.mrf.mxu1 }
 0x110   :  { %v7590_v17 = vpop.f32.mrf.mxu0 }
 0x111   :  { %v2560_v21 = vadd.f32 %v2559_v15, %v2486_v16  ;;  %v2705_v24 = vpop.f32.mrf.mxu1 }
 0x112   :  { %v2633_v22 = vpop.f32.mrf.mxu0 }
 0x113   :  { %v2634_v25 = vadd.f32 %v2633_v22, %v2560_v21  ;;  %v7605_v27 = vpop.f32.mrf.mxu1 }
 0x114   :  { %v7600_v26 = vpop.f32.mrf.mxu0 }
 0x115   :  { %v2706_v28 = vadd.f32 %v2705_v24, %v2634_v25  ;;  %v2863_v31 = vpop.f32.mrf.mxu1 }
 0x116   :  { %v2787_v30 = vpop.f32.mrf.mxu0 }
 0x117   :  { %7213 = vst [vmem:[%s8521_s2 + $0x50] sm:$0xff] %v2706_v28  ;;  %v7615_v33 = vpop.f32.mrf.mxu1  ;;  %v2864_v34 = vadd.f32 %v2863_v31, %v2787_v30 }
 0x118   :  { %v7610_v32 = vpop.f32.mrf.mxu0 }
 0x119   :  { %v3011_v36 = vpop.f32.mrf.mxu1 }
 0x11a   :  { %v2937_v35 = vpop.f32.mrf.mxu0 }
 0x11b   :  { %v2938_v37 = vadd.f32 %v2937_v35, %v2864_v34  ;;  %v7625_v39 = vpop.f32.mrf.mxu1 }
 0x11c   :  { %v7620_v38 = vpop.f32.mrf.mxu0 }
 0x11d   :  { %v3012_v40 = vadd.f32 %v3011_v36, %v2938_v37  ;;  %v3157_v42 = vpop.f32.mrf.mxu1 }
 0x11e   :  { %v3085_v41 = vpop.f32.mrf.mxu0 }
 0x11f   :  { %v3086_v43 = vadd.f32 %v3085_v41, %v3012_v40  ;;  %v7635_v45 = vpop.f32.mrf.mxu1 }
 0x120   :  { %v7630_v44 = vpop.f32.mrf.mxu0 }
 0x121   :  { %v3158_v46 = vadd.f32 %v3157_v42, %v3086_v43  ;;  %v3309_v48 = vpop.f32.mrf.mxu1 }
 0x122   :  { %v3233_v47 = vpop.f32.mrf.mxu0 }
 0x123   :  { %7216 = vst [vmem:[%s8521_s2 + $0x18] sm:$0xff] %v3158_v46  ;;  %v7645_v50 = vpop.f32.mrf.mxu1  ;;  %v3310_v51 = vadd.f32 %v3309_v48, %v3233_v47 }
 0x124   :  { %v7640_v49 = vpop.f32.mrf.mxu0 }
 0x125   :  { %v3457_v53 = vpop.f32.mrf.mxu1 }
 0x126   :  { %v3383_v52 = vpop.f32.mrf.mxu0 }
 0x127   :  { %v3384_v54 = vadd.f32 %v3383_v52, %v3310_v51  ;;  %v7655_v7 = vpop.f32.mrf.mxu1 }
 0x128   :  { %v7650_v20 = vpop.f32.mrf.mxu0 }
 0x129   :  { %v3458_v11 = vadd.f32 %v3457_v53, %v3384_v54  ;;  %v3603_v18 = vpop.f32.mrf.mxu1 }
 0x12a   :  { %v3531_v14 = vpop.f32.mrf.mxu0 }
 0x12b   :  { %v3532_v29 = vadd.f32 %v3531_v14, %v3458_v11  ;;  %v7665_v55 = vpop.f32.mrf.mxu1 }
 0x12c   :  { %v7660_v23 = vpop.f32.mrf.mxu0 }
 0x12d   :  { %v3604_v56 = vadd.f32 %v3603_v18, %v3532_v29  ;;  %v3761_v58 = vpop.f32.mrf.mxu1 }
 0x12e   :  { %v3685_v57 = vpop.f32.mrf.mxu0 }
 0x12f   :  { %7217 = vst [vmem:[%s8521_s2 + $0x58] sm:$0xff] %v3604_v56  ;;  %v7675_v60 = vpop.f32.mrf.mxu1  ;;  %v3762_v61 = vadd.f32 %v3761_v58, %v3685_v57 }
 0x130   :  { %v7670_v59 = vpop.f32.mrf.mxu0 }
 0x131   :  { %v3909_v63 = vpop.f32.mrf.mxu1 }
 0x132   :  { %v3835_v62 = vpop.f32.mrf.mxu0 }
 0x133   :  { %v3836_v0 = vadd.f32 %v3835_v62, %v3762_v61  ;;  %v7685_v2 = vpop.f32.mrf.mxu1 }
 0x134   :  { %v7680_v1 = vpop.f32.mrf.mxu0 }
 0x135   :  { %v3910_v3 = vadd.f32 %v3909_v63, %v3836_v0  ;;  %v4055_v4 = vpop.f32.mrf.mxu1 }
 0x136   :  { %v3983_v12 = vpop.f32.mrf.mxu0 }
 0x137   :  { %v3984_v5 = vadd.f32 %v3983_v12, %v3910_v3  ;;  %v7695_v8 = vpop.f32.mrf.mxu1 }
 0x138   :  { %v7690_v6 = vpop.f32.mrf.mxu0 }
 0x139   :  { %v4056_v9 = vadd.f32 %v4055_v4, %v3984_v5  ;;  %v4207_v13 = vpop.f32.mrf.mxu1 }
 0x13a   :  { %v4131_v10 = vpop.f32.mrf.mxu0 }
 0x13b   :  { %7220 = vst [vmem:[%s8521_s2 + $0x20] sm:$0xff] %v4056_v9  ;;  %v7705_v16 = vpop.f32.mrf.mxu1  ;;  %v4208_v17 = vadd.f32 %v4207_v13, %v4131_v10 }
 0x13c   :  { %v7700_v15 = vpop.f32.mrf.mxu0 }
 0x13d   :  { %v4355_v21 = vpop.f32.mrf.mxu1 }
 0x13e   :  { %v4281_v19 = vpop.f32.mrf.mxu0 }
 0x13f   :  { %v4282_v22 = vadd.f32 %v4281_v19, %v4208_v17  ;;  %v7715_v25 = vpop.f32.mrf.mxu1 }
 0x140   :  { %v7710_v24 = vpop.f32.mrf.mxu0 }
 0x141   :  { %v4356_v26 = vadd.f32 %v4355_v21, %v4282_v22  ;;  %v4501_v28 = vpop.f32.mrf.mxu1 }
 0x142   :  { %v4429_v27 = vpop.f32.mrf.mxu0 }
 0x143   :  { %v4430_v30 = vadd.f32 %v4429_v27, %v4356_v26  ;;  %v7725_v32 = vpop.f32.mrf.mxu1 }
 0x144   :  { %v7720_v31 = vpop.f32.mrf.mxu0 }
 0x145   :  { %v4502_v33 = vadd.f32 %v4501_v28, %v4430_v30  ;;  %v4659_v35 = vpop.f32.mrf.mxu1 }
 0x146   :  { %v4583_v34 = vpop.f32.mrf.mxu0 }
 0x147   :  { %7221 = vst [vmem:[%s8521_s2 + $0x60] sm:$0xff] %v4502_v33  ;;  %v7735_v37 = vpop.f32.mrf.mxu1  ;;  %v4660_v38 = vadd.f32 %v4659_v35, %v4583_v34 }
 0x148   :  { %v7730_v36 = vpop.f32.mrf.mxu0 }
 0x149   :  { %v4807_v40 = vpop.f32.mrf.mxu1 }
 0x14a   :  { %v4733_v39 = vpop.f32.mrf.mxu0 }
 0x14b   :  { %v4734_v41 = vadd.f32 %v4733_v39, %v4660_v38  ;;  %v7745_v43 = vpop.f32.mrf.mxu1 }
 0x14c   :  { %v7740_v42 = vpop.f32.mrf.mxu0 }
 0x14d   :  { %v4808_v44 = vadd.f32 %v4807_v40, %v4734_v41  ;;  %v4953_v46 = vpop.f32.mrf.mxu1 }
 0x14e   :  { %v4881_v45 = vpop.f32.mrf.mxu0 }
 0x14f   :  { %v4882_v47 = vadd.f32 %v4881_v45, %v4808_v44  ;;  %v7755_v49 = vpop.f32.mrf.mxu1 }
 0x150   :  { %v7750_v48 = vpop.f32.mrf.mxu0 }
 0x151   :  { %v4954_v50 = vadd.f32 %v4953_v46, %v4882_v47  ;;  %v5105_v52 = vpop.f32.mrf.mxu1 }
 0x152   :  { %v5029_v51 = vpop.f32.mrf.mxu0 }
 0x153   :  { %7224 = vst [vmem:[%s8521_s2 + $0x28] sm:$0xff] %v4954_v50  ;;  %v7765_v54 = vpop.f32.mrf.mxu1  ;;  %v5106_v20 = vadd.f32 %v5105_v52, %v5029_v51 }
 0x154   :  { %v7760_v53 = vpop.f32.mrf.mxu0 }
 0x155   :  { %v5253_v11 = vpop.f32.mrf.mxu1 }
 0x156   :  { %v5179_v7 = vpop.f32.mrf.mxu0 }
 0x157   :  { %v5180_v14 = vadd.f32 %v5179_v7, %v5106_v20  ;;  %v7775_v29 = vpop.f32.mrf.mxu1 }
 0x158   :  { %v7770_v18 = vpop.f32.mrf.mxu0 }
 0x159   :  { %v5254_v23 = vadd.f32 %v5253_v11, %v5180_v14  ;;  %v5399_v56 = vpop.f32.mrf.mxu1 }
 0x15a   :  { %v5327_v55 = vpop.f32.mrf.mxu0 }
 0x15b   :  { %v5328_v57 = vadd.f32 %v5327_v55, %v5254_v23  ;;  %v7785_v59 = vpop.f32.mrf.mxu1 }
 0x15c   :  { %v7780_v58 = vpop.f32.mrf.mxu0 }
 0x15d   :  { %v5400_v60 = vadd.f32 %v5399_v56, %v5328_v57  ;;  %v5557_v62 = vpop.f32.mrf.mxu1 }
 0x15e   :  { %v5481_v61 = vpop.f32.mrf.mxu0 }
 0x15f   :  { %7225 = vst [vmem:[%s8521_s2 + $0x68] sm:$0xff] %v5400_v60  ;;  %v7795_v0 = vpop.f32.mrf.mxu1  ;;  %v5558_v1 = vadd.f32 %v5557_v62, %v5481_v61 }
 0x160   :  { %v7790_v63 = vpop.f32.mrf.mxu0 }
 0x161   :  { %v5705_v3 = vpop.f32.mrf.mxu1 }
 0x162   :  { %v5631_v2 = vpop.f32.mrf.mxu0 }
 0x163   :  { %v5632_v12 = vadd.f32 %v5631_v2, %v5558_v1  ;;  %v7805_v5 = vpop.f32.mrf.mxu1 }
 0x164   :  { %v7800_v4 = vpop.f32.mrf.mxu0 }
 0x165   :  { %v5706_v6 = vadd.f32 %v5705_v3, %v5632_v12  ;;  %v5851_v9 = vpop.f32.mrf.mxu1 }
 0x166   :  { %v5779_v8 = vpop.f32.mrf.mxu0 }
 0x167   :  { %v5780_v10 = vadd.f32 %v5779_v8, %v5706_v6  ;;  %v7815_v15 = vpop.f32.mrf.mxu1 }
 0x168   :  { %v7810_v13 = vpop.f32.mrf.mxu0 }
 0x169   :  { %v5852_v16 = vadd.f32 %v5851_v9, %v5780_v10  ;;  %v6003_v19 = vpop.f32.mrf.mxu1 }
 0x16a   :  { %v5927_v17 = vpop.f32.mrf.mxu0 }
 0x16b   :  { %7228 = vst [vmem:[%s8521_s2 + $0x30] sm:$0xff] %v5852_v16  ;;  %v7825_v22 = vpop.f32.mrf.mxu1  ;;  %v6004_v24 = vadd.f32 %v6003_v19, %v5927_v17 }
 0x16c   :  { %v7820_v21 = vpop.f32.mrf.mxu0 }
 0x16d   :  { %v6151_v26 = vpop.f32.mrf.mxu1 }
 0x16e   :  { %v6077_v25 = vpop.f32.mrf.mxu0 }
 0x16f   :  { %v6078_v27 = vadd.f32 %v6077_v25, %v6004_v24  ;;  %v7835_v30 = vpop.f32.mrf.mxu1 }
 0x170   :  { %v7830_v28 = vpop.f32.mrf.mxu0 }
 0x171   :  { %v6152_v31 = vadd.f32 %v6151_v26, %v6078_v27  ;;  %v6297_v33 = vpop.f32.mrf.mxu1 }
 0x172   :  { %v6225_v32 = vpop.f32.mrf.mxu0 }
 0x173   :  { %v6226_v34 = vadd.f32 %v6225_v32, %v6152_v31  ;;  %v7845_v36 = vpop.f32.mrf.mxu1 }
 0x174   :  { %v7840_v35 = vpop.f32.mrf.mxu0 }
 0x175   :  { %v6298_v37 = vadd.f32 %v6297_v33, %v6226_v34  ;;  %v6455_v39 = vpop.f32.mrf.mxu1 }
 0x176   :  { %v6379_v38 = vpop.f32.mrf.mxu0 }
 0x177   :  { %7229 = vst [vmem:[%s8521_s2 + $0x70] sm:$0xff] %v6298_v37  ;;  %v7855_v41 = vpop.f32.mrf.mxu1  ;;  %v6456_v42 = vadd.f32 %v6455_v39, %v6379_v38 }
 0x178   :  { %v7850_v40 = vpop.f32.mrf.mxu0 }
 0x179   :  { %v6603_v44 = vpop.f32.mrf.mxu1 }
 0x17a   :  { %v6529_v43 = vpop.f32.mrf.mxu0 }
 0x17b   :  { %v6530_v45 = vadd.f32 %v6529_v43, %v6456_v42  ;;  %v7865_v47 = vpop.f32.mrf.mxu1 }
 0x17c   :  { %v7860_v46 = vpop.f32.mrf.mxu0 }
 0x17d   :  { %v6604_v48 = vadd.f32 %v6603_v44, %v6530_v45  ;;  %v6749_v50 = vpop.f32.mrf.mxu1 }
 0x17e   :  { %v6677_v49 = vpop.f32.mrf.mxu0 }
 0x17f   :  { %v6678_v51 = vadd.f32 %v6677_v49, %v6604_v48  ;;  %v7875_v53 = vpop.f32.mrf.mxu1 }
 0x180   :  { %v7870_v52 = vpop.f32.mrf.mxu0 }
 0x181   :  { %v6750_v54 = vadd.f32 %v6749_v50, %v6678_v51  ;;  %v6901_v7 = vpop.f32.mrf.mxu1 }
 0x182   :  { %v6825_v20 = vpop.f32.mrf.mxu0 }
 0x183   :  { %7232 = vst [vmem:[%s8521_s2 + $0x38] sm:$0xff] %v6750_v54  ;;  %v7885_v14 = vpop.f32.mrf.mxu1  ;;  %v6902_v18 = vadd.f32 %v6901_v7, %v6825_v20 }
 0x184   :  { %v7880_v11 = vpop.f32.mrf.mxu0 }
 0x185   :  { %v7049_v23 = vpop.f32.mrf.mxu1 }
 0x186   :  { %v6975_v29 = vpop.f32.mrf.mxu0 }
 0x187   :  { %v6976_v55 = vadd.f32 %v6975_v29, %v6902_v18  ;;  %v7895_v57 = vpop.f32.mrf.mxu1 }
 0x188   :  { %v7890_v56 = vpop.f32.mrf.mxu0 }
 0x189   :  { %v7050_v58 = vadd.f32 %v7049_v23, %v6976_v55  ;;  %v7195_v60 = vpop.f32.mrf.mxu1 }
 0x18a   :  { %v7123_v59 = vpop.f32.mrf.mxu0 }
 0x18b   :  { %v7124_v61 = vadd.f32 %v7123_v59, %v7050_v58  ;;  %v7905_v63 = vpop.f32.mrf.mxu1 }
 0x18c   :  { %v7900_v62 = vpop.f32.mrf.mxu0 }
 0x18d   :  { %v7196_v0 = vadd.f32 %v7195_v60, %v7124_v61 }
 0x18f   :  { %7233 = vst [vmem:[%s8521_s2 + $0x78] sm:$0xff] %v7196_v0 }

</bundles_post_ra>
